<compile_context>
chip_gen: v6e
topology: v6e:2x2x1
jax: 0.10.0
libtpu: 0.0.40
codegen_flags: <defaults>
</compile_context>

<pallas_src>
import functools

import jax
import jax.numpy as jnp
from jax.experimental import pallas as pl
from jax.experimental.pallas import tpu as pltpu


# ----------------------------------------------------------------------------
# Kernel
# ----------------------------------------------------------------------------
def _lstm_cell_kernel(x_ref, h_ref, c_ref, w_ref, u_ref, b_ref,
                      new_h_ref, new_c_ref):
    # Two MXU dots (K = H each), f32 accumulation; bias (+1.0 on f) pre-folded.
    gates = jnp.dot(x_ref[...], w_ref[...], preferred_element_type=jnp.float32)
    gates = gates + jnp.dot(h_ref[...], u_ref[...],
                            preferred_element_type=jnp.float32)
    gates = gates + b_ref[...]

    hb = c_ref.shape[1]
    i_g = gates[:, 0 * hb:1 * hb]
    j_g = gates[:, 1 * hb:2 * hb]
    f_g = gates[:, 2 * hb:3 * hb]   # +1.0 forget bias already folded into b
    o_g = gates[:, 3 * hb:4 * hb]

    c = c_ref[...].astype(jnp.float32)
    new_c = c * jax.nn.sigmoid(f_g) + jax.nn.sigmoid(i_g) * jnp.tanh(j_g)
    new_h = jnp.tanh(new_c) * jax.nn.sigmoid(o_g)

    new_c_ref[...] = new_c.astype(new_c_ref.dtype)
    new_h_ref[...] = new_h.astype(new_h_ref.dtype)


# ----------------------------------------------------------------------------
# Generation-aware tile sizing
# ----------------------------------------------------------------------------
def _tpu_vmem_capacity_bytes():
    try:
        return int(pltpu.get_tpu_info().vmem_capacity_bytes)
    except Exception:
        return 64 * 1024 * 1024  # conservative default (v7x per-TC VMEM)


def _vmem_bytes_needed(B, H, block_h):
    """Per-grid-step working set, assuming default double buffering."""
    w_u = 2 * 2 * (H * 4 * block_h * 2)      # W + U tiles, bf16, double-buffered
    acts = 2 * 2 * (B * H * 2)               # x + h, bf16, double-buffered
    c_in = 2 * (B * block_h * 4)             # c slice, f32
    outs = 2 * 2 * (B * block_h * 4)         # new_h + new_c slices, f32
    bias = 2 * (4 * block_h * 4)             # packed bias, f32
    return w_u + acts + c_in + outs + bias


def choose_block_h(hidden, batch):
    """Pick the largest lane-dense hidden block that fits in VMEM (25% headroom).

    For H <= 1024 (and fitting), collapse the grid entirely (block_h = H):
    one grid step, whole packed weights in a single block.
    """
    cap = _tpu_vmem_capacity_bytes()
    budget = int(cap * 0.75)

    def fits(bh):
        return _vmem_bytes_needed(batch, hidden, bh) <= budget

    if hidden <= 1024 and fits(hidden):
        return hidden
    for bh in (512, 256, 128):
        if hidden % bh == 0 and fits(bh):
            return bh
    assert hidden % 128 == 0, "hidden must be a multiple of 128 when tiled"
    return 128
    # TODO(synk): for very large H on 64 MiB v7x, add a K ("arbitrary") grid
    # axis over the 2H rows with an f32 VMEM accumulator instead of shrinking
    # block_h further.


# ----------------------------------------------------------------------------
# Parameter packing (gate order i, j, f, o; +1.0 forget bias folded in)
# ----------------------------------------------------------------------------
def pack_params(W_list, U_list, b_list, block_h):
    """Pack per-gate parameters into the kernel layout.

    Returns:
      W_packed: (H, n_blk * 4 * block_h) bfloat16 — per hidden block j the
                columns are [i | j | f | o] gate weights for that block.
      U_packed: same layout for the recurrent weights.
      b_packed: (1, n_blk * 4 * block_h) float32, with +1.0 folded into the
                forget-gate slice.
    """
    H = W_list[0].shape[0]
    assert H % block_h == 0
    n_blk = H // block_h

    def pack_w(mats):
        w = jnp.stack(mats, axis=1)                       # (H, 4, H)
        w = (w.reshape(H, 4, n_blk, block_h)
              .transpose(0, 2, 1, 3)
              .reshape(H, n_blk * 4 * block_h))
        return w.astype(jnp.bfloat16)

    b = jnp.stack(b_list, axis=0)                         # (4, H); i, j, f, o
    b = b.at[2].add(1.0)                                  # fold +1.0 forget bias
    b = (b.reshape(4, n_blk, block_h)
          .transpose(1, 0, 2)
          .reshape(1, n_blk * 4 * block_h)).astype(jnp.float32)

    return pack_w(W_list), pack_w(U_list), b


# ----------------------------------------------------------------------------
# Wrapper
# ----------------------------------------------------------------------------
@functools.partial(jax.jit, static_argnames=("block_h",))
def lstm_cell(inputs, state, W_packed, U_packed, b_packed, *, block_h):
    """Pallas LSTM cell. Returns (new_h, (new_c, new_h)) like the torch module."""
    c, h = state
    B, H = inputs.shape
    assert H % block_h == 0
    n_blk = H // block_h
    assert W_packed.shape == (H, n_blk * 4 * block_h)
    assert U_packed.shape == (H, n_blk * 4 * block_h)
    assert b_packed.shape == (1, n_blk * 4 * block_h)

    # bf16 activations feed the MXU; f32 accumulate inside the kernel.
    x_bf = inputs.astype(jnp.bfloat16)
    h_bf = h.astype(jnp.bfloat16)

    # Explicit VMEM budget (generation-aware) with slack; advisory cost hint.
    needed = _vmem_bytes_needed(B, H, block_h)
    vmem_cap = _tpu_vmem_capacity_bytes()
    vmem_limit = min(max(32 * 1024 * 1024, int(needed * 1.25) + (2 << 20)),
                     vmem_cap)

    cost = pl.CostEstimate(
        flops=2 * B * (2 * H) * (4 * H),
        transcendentals=5 * B * H,
        bytes_accessed=(2 * (H * 4 * H) * 2        # W + U (bf16)
                        + 2 * B * H * 2            # x + h (bf16)
                        + B * H * 4                # c (f32)
                        + 2 * B * H * 4            # new_h + new_c (f32)
                        + 4 * H * 4),              # bias (f32)
    )

    new_h, new_c = pl.pallas_call(
        _lstm_cell_kernel,
        out_shape=(
            jax.ShapeDtypeStruct((B, H), inputs.dtype),   # new_h
            jax.ShapeDtypeStruct((B, H), jnp.float32),    # new_c kept in f32
        ),
        grid=(n_blk,),
        in_specs=[
            pl.BlockSpec((B, H), lambda j: (0, 0)),             # x (bf16)
            pl.BlockSpec((B, H), lambda j: (0, 0)),             # h (bf16)
            pl.BlockSpec((B, block_h), lambda j: (0, j)),       # c slice
            pl.BlockSpec((H, 4 * block_h), lambda j: (0, j)),   # packed W
            pl.BlockSpec((H, 4 * block_h), lambda j: (0, j)),   # packed U
            pl.BlockSpec((1, 4 * block_h), lambda j: (0, j)),   # packed bias
        ],
        out_specs=(
            pl.BlockSpec((B, block_h), lambda j: (0, j)),       # new_h
            pl.BlockSpec((B, block_h), lambda j: (0, j)),       # new_c
        ),
        compiler_params=pltpu.CompilerParams(
            dimension_semantics=("parallel",),
            vmem_limit_bytes=vmem_limit,
        ),
        cost_estimate=cost,
        # TODO(synk): add input_output_aliases (new_c over c, new_h over h)
        # for the recurrent/scan driver so state updates stay in place.
    )(x_bf, h_bf, c, W_packed, U_packed, b_packed)

    return new_h, (new_c, new_h)


# ----------------------------------------------------------------------------
# Reference + init
# ----------------------------------------------------------------------------
def xavier_uniform(key, shape, dtype=jnp.float32):
    fan_in, fan_out = shape
    limit = jnp.sqrt(6.0 / (fan_in + fan_out))
    return jax.random.uniform(key, shape, dtype, minval=-limit, maxval=limit)


def reference_lstm(inputs, state, W_list, U_list, b_list):
    """Plain-JAX f32 reference mirroring the PyTorch module exactly."""
    c, h = state
    i = inputs @ W_list[0] + h @ U_list[0] + b_list[0]
    j = inputs @ W_list[1] + h @ U_list[1] + b_list[1]
    f = inputs @ W_list[2] + h @ U_list[2] + b_list[2]
    o = inputs @ W_list[3] + h @ U_list[3] + b_list[3]
    new_c = c * jax.nn.sigmoid(f + 1.0) + jax.nn.sigmoid(i) * jnp.tanh(j)
    new_h = jnp.tanh(new_c) * jax.nn.sigmoid(o)
    return new_h, (new_c, new_h)


if __name__ == "__main__":
    batch = 8
    hidden = 256
    dtype = jnp.float32

    key = jax.random.PRNGKey(0)
    keys = jax.random.split(key, 11)

    # Deterministic parameter init matching the module: xavier W/U, zero b.
    W_list = [xavier_uniform(keys[k], (hidden, hidden), dtype) for k in range(4)]
    U_list = [xavier_uniform(keys[4 + k], (hidden, hidden), dtype) for k in range(4)]
    b_list = [jnp.zeros((hidden,), dtype) for _ in range(4)]

    x = jax.random.normal(keys[8], (batch, hidden), dtype)
    h0 = jax.random.normal(keys[9], (batch, hidden), dtype)
    c0 = jax.random.normal(keys[10], (batch, hidden), dtype)

    ref_h, (ref_c, _) = reference_lstm(x, (c0, h0), W_list, U_list, b_list)

    # --- Path 1: generation-aware block_h (collapses to a single grid step
    # here, since H <= 1024 fits comfortably in VMEM on every generation).
    bh = choose_block_h(hidden, batch)
    Wp, Up, bp = pack_params(W_list, U_list, b_list, bh)
    new_h, (new_c, _) = lstm_cell(x, (c0, h0), Wp, Up, bp, block_h=bh)
    jax.block_until_ready((new_h, new_c))

    assert jnp.allclose(new_h, ref_h, atol=3e-2, rtol=3e-2), (
        float(jnp.max(jnp.abs(new_h - ref_h))))
    assert jnp.allclose(new_c, ref_c, atol=3e-2, rtol=3e-2), (
        float(jnp.max(jnp.abs(new_c - ref_c))))

    # --- Path 2: explicitly exercise the tiled grid (n_blk = 2, even → fully
    # shards across both TensorCores on v7x).
    bh2 = 128
    Wp2, Up2, bp2 = pack_params(W_list, U_list, b_list, bh2)
    new_h2, (new_c2, _) = lstm_cell(x, (c0, h0), Wp2, Up2, bp2, block_h=bh2)
    jax.block_until_ready((new_h2, new_c2))

    assert jnp.allclose(new_h2, ref_h, atol=3e-2, rtol=3e-2), (
        float(jnp.max(jnp.abs(new_h2 - ref_h))))
    assert jnp.allclose(new_c2, ref_c, atol=3e-2, rtol=3e-2), (
        float(jnp.max(jnp.abs(new_c2 - ref_c))))

    print("KERNEL_OK")
</pallas_src>

<mosaic_0001>
module attributes {stable_mosaic.version = 11 : i64} {
  func.func @_lstm_cell_kernel(%arg0: i32, %arg1: memref<8x256xbf16, #tpu.memory_space<vmem>>, %arg2: memref<8x256xbf16, #tpu.memory_space<vmem>>, %arg3: memref<8x256xf32, #tpu.memory_space<vmem>>, %arg4: memref<256x1024xbf16, #tpu.memory_space<vmem>>, %arg5: memref<256x1024xbf16, #tpu.memory_space<vmem>>, %arg6: memref<1x1024xf32, #tpu.memory_space<vmem>>, %arg7: memref<8x256xf32, #tpu.memory_space<vmem>>, %arg8: memref<8x256xf32, #tpu.memory_space<vmem>>) attributes {dimension_semantics = [#tpu.dimension_semantics<parallel>], iteration_bounds = array<i64: 1>, scalar_prefetch = 0 : i64, scratch_operands = 0 : i64, tpu.core_type = #tpu.core_type<tc>, window_params = [{pipeline_mode = #tpu.pipeline_mode<synchronous>, transform_indices = @transform_0, window_bounds = array<i64: 8, 256>}, {pipeline_mode = #tpu.pipeline_mode<synchronous>, transform_indices = @transform_1, window_bounds = array<i64: 8, 256>}, {transform_indices = @transform_2, window_bounds = array<i64: 8, 256>}, {transform_indices = @transform_3, window_bounds = array<i64: 256, 1024>}, {transform_indices = @transform_4, window_bounds = array<i64: 256, 1024>}, {transform_indices = @transform_5, window_bounds = array<i64: 1, 1024>}, {transform_indices = @transform_6, window_bounds = array<i64: 8, 256>}, {transform_indices = @transform_7, window_bounds = array<i64: 8, 256>}]} {
    %c0 = arith.constant 0 : index
    %c0_0 = arith.constant 0 : index
    %0 = vector.load %arg1[%c0, %c0_0] : memref<8x256xbf16, #tpu.memory_space<vmem>>, vector<8x256xbf16>
    %c0_1 = arith.constant 0 : index
    %c0_2 = arith.constant 0 : index
    %1 = vector.load %arg4[%c0_1, %c0_2] : memref<256x1024xbf16, #tpu.memory_space<vmem>>, vector<256x1024xbf16>
    %cst = arith.constant dense<0.000000e+00> : vector<8x1024xf32>
    %2 = tpu.matmul %0, %1, %cst {dimension_numbers = #tpu.dot_dimension_numbers<[1], [0], [0], [1], [0, 0, 1, 1], [], []>} : vector<8x256xbf16>, vector<256x1024xbf16>, vector<8x1024xf32> -> vector<8x1024xf32>
    %c0_3 = arith.constant 0 : index
    %c0_4 = arith.constant 0 : index
    %3 = vector.load %arg2[%c0_3, %c0_4] : memref<8x256xbf16, #tpu.memory_space<vmem>>, vector<8x256xbf16>
    %c0_5 = arith.constant 0 : index
    %c0_6 = arith.constant 0 : index
    %4 = vector.load %arg5[%c0_5, %c0_6] : memref<256x1024xbf16, #tpu.memory_space<vmem>>, vector<256x1024xbf16>
    %cst_7 = arith.constant dense<0.000000e+00> : vector<8x1024xf32>
    %5 = tpu.matmul %3, %4, %cst_7 {dimension_numbers = #tpu.dot_dimension_numbers<[1], [0], [0], [1], [0, 0, 1, 1], [], []>} : vector<8x256xbf16>, vector<256x1024xbf16>, vector<8x1024xf32> -> vector<8x1024xf32>
    %6 = arith.addf %2, %5 : vector<8x1024xf32>
    %c0_8 = arith.constant 0 : index
    %c0_9 = arith.constant 0 : index
    %7 = vector.load %arg6[%c0_8, %c0_9] : memref<1x1024xf32, #tpu.memory_space<vmem>>, vector<1x1024xf32>
    %8 = vector.broadcast %7 : vector<1x1024xf32> to vector<8x1024xf32>
    %9 = arith.addf %6, %8 : vector<8x1024xf32>
    %10 = vector.extract_strided_slice %9 {offsets = [0, 0], sizes = [8, 256], strides = [1, 1]} : vector<8x1024xf32> to vector<8x256xf32>
    %11 = vector.extract_strided_slice %9 {offsets = [0, 256], sizes = [8, 256], strides = [1, 1]} : vector<8x1024xf32> to vector<8x256xf32>
    %12 = vector.extract_strided_slice %9 {offsets = [0, 512], sizes = [8, 256], strides = [1, 1]} : vector<8x1024xf32> to vector<8x256xf32>
    %13 = vector.extract_strided_slice %9 {offsets = [0, 768], sizes = [8, 256], strides = [1, 1]} : vector<8x1024xf32> to vector<8x256xf32>
    %c0_10 = arith.constant 0 : index
    %c0_11 = arith.constant 0 : index
    %14 = vector.load %arg3[%c0_10, %c0_11] : memref<8x256xf32, #tpu.memory_space<vmem>>, vector<8x256xf32>
    %15 = arith.negf %12 : vector<8x256xf32>
    %16 = math.exp %15 : vector<8x256xf32>
    %cst_12 = arith.constant 1.000000e+00 : f32
    %17 = vector.broadcast %cst_12 : f32 to vector<8x256xf32>
    %18 = arith.addf %17, %16 : vector<8x256xf32>
    %19 = arith.divf %17, %18 : vector<8x256xf32>
    %20 = arith.mulf %14, %19 : vector<8x256xf32>
    %21 = arith.negf %10 : vector<8x256xf32>
    %22 = math.exp %21 : vector<8x256xf32>
    %cst_13 = arith.constant 1.000000e+00 : f32
    %23 = vector.broadcast %cst_13 : f32 to vector<8x256xf32>
    %24 = arith.addf %23, %22 : vector<8x256xf32>
    %25 = arith.divf %23, %24 : vector<8x256xf32>
    %26 = math.tanh %11 : vector<8x256xf32>
    %27 = arith.mulf %25, %26 : vector<8x256xf32>
    %28 = arith.addf %20, %27 : vector<8x256xf32>
    %29 = math.tanh %28 : vector<8x256xf32>
    %30 = arith.negf %13 : vector<8x256xf32>
    %31 = math.exp %30 : vector<8x256xf32>
    %cst_14 = arith.constant 1.000000e+00 : f32
    %32 = vector.broadcast %cst_14 : f32 to vector<8x256xf32>
    %33 = arith.addf %32, %31 : vector<8x256xf32>
    %34 = arith.divf %32, %33 : vector<8x256xf32>
    %35 = arith.mulf %29, %34 : vector<8x256xf32>
    %c0_15 = arith.constant 0 : index
    %c0_16 = arith.constant 0 : index
    %36 = vector.load %arg8[%c0_15, %c0_16] : memref<8x256xf32, #tpu.memory_space<vmem>>, vector<8x256xf32>
    tpu.vector_store %arg8[%c0_15, %c0_16], %28 {strides = array<i32>} : memref<8x256xf32, #tpu.memory_space<vmem>>, vector<8x256xf32>,
    %c0_17 = arith.constant 0 : index
    %c0_18 = arith.constant 0 : index
    %37 = vector.load %arg7[%c0_17, %c0_18] : memref<8x256xf32, #tpu.memory_space<vmem>>, vector<8x256xf32>
    tpu.vector_store %arg7[%c0_17, %c0_18], %35 {strides = array<i32>} : memref<8x256xf32, #tpu.memory_space<vmem>>, vector<8x256xf32>,
    return
  }
  func.func @transform_0(%arg0: i32) -> (i32, i32) {
    %c0_i32 = arith.constant 0 : i32
    %c0_i32_0 = arith.constant 0 : i32
    %c0_i32_1 = arith.constant 0 : i32
    return %c0_i32, %c0_i32_0 : i32, i32
  }
  func.func @transform_1(%arg0: i32) -> (i32, i32) {
    %c0_i32 = arith.constant 0 : i32
    %c0_i32_0 = arith.constant 0 : i32
    %c0_i32_1 = arith.constant 0 : i32
    return %c0_i32, %c0_i32_0 : i32, i32
  }
  func.func @transform_2(%arg0: i32) -> (i32, i32) {
    %c0_i32 = arith.constant 0 : i32
    %c0_i32_0 = arith.constant 0 : i32
    return %c0_i32, %arg0 : i32, i32
  }
  func.func @transform_3(%arg0: i32) -> (i32, i32) {
    %c0_i32 = arith.constant 0 : i32
    %c0_i32_0 = arith.constant 0 : i32
    return %c0_i32, %arg0 : i32, i32
  }
  func.func @transform_4(%arg0: i32) -> (i32, i32) {
    %c0_i32 = arith.constant 0 : i32
    %c0_i32_0 = arith.constant 0 : i32
    return %c0_i32, %arg0 : i32, i32
  }
  func.func @transform_5(%arg0: i32) -> (i32, i32) {
    %c0_i32 = arith.constant 0 : i32
    %c0_i32_0 = arith.constant 0 : i32
    return %c0_i32, %arg0 : i32, i32
  }
  func.func @transform_6(%arg0: i32) -> (i32, i32) {
    %c0_i32 = arith.constant 0 : i32
    %c0_i32_0 = arith.constant 0 : i32
    return %c0_i32, %arg0 : i32, i32
  }
  func.func @transform_7(%arg0: i32) -> (i32, i32) {
    %c0_i32 = arith.constant 0 : i32
    %c0_i32_0 = arith.constant 0 : i32
    return %c0_i32, %arg0 : i32, i32
  }
}

</mosaic_0001>

<bundles_post_ra>
// kernel: lstm_cell.1
= control target key start
LH: loop header
LB: loop body
LE: loop exit
PB: predicated region body
PF: predicated region fallthrough
CT: control target
= control target key end

     0   :  { %13 = vsyncpa [#allocation3], 0  ;;  %s2568_s0 = inlined_call_operand.vmem [shape: bf16[8,256], index: 0, kind: input, shape index: {}]   ;;  %s2569_s1 = inlined_call_operand.vmem [shape: bf16[8,256], index: 1, kind: input, shape index: {}]   ;;  %s2570_s2 = inlined_call_operand.vmem [shape: f32[8,256], index: 2, kind: input, shape index: {}]   ;;  %s2571_s3 = inlined_call_operand.hbm [shape: bf16[256,1024], index: 3, kind: input, shape index: {}]   ;;  %s2572_s4 = inlined_call_operand.hbm [shape: bf16[256,1024], index: 4, kind: input, shape index: {}]   ;;  %s2573_s5 = inlined_call_operand.vmem [shape: f32[1,1024], index: 5, kind: input, shape index: {}]   ;;  %s2574_s6 = inlined_call_operand.vmem [shape: f32[8,256], index: 6, kind: output, shape index: {0}]   ;;  %s2575_s7 = inlined_call_operand.hbm [shape: f32[8,256], index: 7, kind: output, shape index: {1}]  }
   0x1   :  { %14 = vsyncpa [#allocation6], 0 }
   0x2   :  { %15 = vsyncpa [#allocation4], 0  ;;  %s2431_s24 = smov [#allocation2]  }
   0x3   :  { %s27_s25 = sshll.u32 %s2431_s24, 4  ;;  %s28_s25 = int_to_ptr.vmem [resolvable:$true] %s27_s25 }
   0x4   :  { %s2373_s26 = scalar_lea.vmem %s28_s25, 16384  ;;  %p2378_p1 = scmp.lt.s32.totalorder %s28_s25, %s28_s25 }
   0x5   :  { %p2374_p0 = scmp.ne.s32.totalorder %s28_s25, %s2373_s26  ;;  %p2379_p2 = scmp.lt.s32.totalorder %s2373_s26, %s2373_s26 }
   0x7   :  { %p2380_p3 = por %p2379_p2, %p2378_p1 }
   0x9   :  { %p2381_p4 = pnand %p2380_p3, %p2374_p0 }
   0xb   :  { %2384 = shalt.err (!%p2381_p4)
}
   0xc   :  { %s2432_s27 = smov 512   ;;  %s2433_s28 = smov 32  }
   0xd   :  { %33 = dma.hbm_to_vmem [thread:$0]  %s2571_s3, 16384, %s28_s25, [#allocation3], %s2432_s27, %s2432_s27, %s2433_s28  }
   0xe   :  { %s2434_s8 = smov [#allocation5]  }
   0xf   :  { %s39_s9 = sshll.u32 %s2434_s8, 4  ;;  %s40_s9 = int_to_ptr.vmem [resolvable:$true] %s39_s9 }
  0x10   :  { %s2393_s10 = scalar_lea.vmem %s40_s9, 16384  ;;  %p2398_p6 = scmp.lt.s32.totalorder %s40_s9, %s40_s9 }
  0x11   :  { %p2394_p5 = scmp.ne.s32.totalorder %s40_s9, %s2393_s10  ;;  %p2399_p7 = scmp.lt.s32.totalorder %s2393_s10, %s2393_s10 }
  0x13   :  { %p2400_p8 = por %p2399_p7, %p2398_p6 }
  0x15   :  { %p2401_p9 = pnand %p2400_p8, %p2394_p5 }
  0x17   :  { %2404 = shalt.err (!%p2401_p9)
}
  0x18   :  { %45 = dma.hbm_to_vmem [thread:$0]  %s2572_s4, 16384, %s40_s9, [#allocation6], %s2432_s27, %s2432_s27, %s2433_s28  }
  0x19   :  { %2425 = dma.done.wait [#allocation3], 16384  }
  0x1a   :  { %2426 = vsyncadd [#allocation3], 4294950912 }
  0x1b   :  { %2427 = dma.done.wait [#allocation6], 16384  }
  0x1c   :  { %2428 = vsyncadd [#allocation6], 4294950912  ;;  %v240_v0 = vld [vmem:[#allocation5 + $0x1c0] sm:$0xff]  ;;  %v241_v2 = vld [vmem:[#allocation5 + $0x1c8] sm:$0xff]  ;;  %s2435_s18 = smov [#allocation7]  }
  0x1d   :  { %v244_v1 = vld [vmem:[#allocation5 + $0x1e0] sm:$0xff]  ;;  %v245_v4 = vld [vmem:[#allocation5 + $0x1e8] sm:$0xff]  ;;  %s2046_s19 = sshll.u32 %s2435_s18, 4  ;;  %s2047_s19 = int_to_ptr.vmem [resolvable:$true] %s2046_s19 }
  0x1e   :  { %v2117_v3 = vcombine.high %v240_v0, %v244_v1  ;;  %v2116_v5 = vcombine.low %v240_v0, %v244_v1  ;;  %v232_v6 = vld [vmem:[#allocation5 + $0x180] sm:$0xff]  ;;  %v2119_v8 = vcombine.high %v241_v2, %v245_v4  ;;  %v2118_v9 = vcombine.low %v241_v2, %v245_v4  ;;  %v233_v11 = vld [vmem:[#allocation5 + $0x188] sm:$0xff]  ;;  %s2405_s20 = scalar_lea.vmem %s2047_s19, 256  ;;  %p2410_p11 = scmp.lt.s32.totalorder %s2047_s19, %s2047_s19 }
  0x1f   :  { %v236_v7 = vld [vmem:[#allocation5 + $0x1a0] sm:$0xff]  ;;  %v237_v12 = vld [vmem:[#allocation5 + $0x1a8] sm:$0xff]  ;;  %p2406_p10 = scmp.ne.s32.totalorder %s2047_s19, %s2405_s20  ;;  %p2411_p12 = scmp.lt.s32.totalorder %s2405_s20, %s2405_s20 }
  0x20   :  { %v2109_v10 = vcombine.high %v232_v6, %v236_v7  ;;  %v224_v13 = vld [vmem:[#allocation5 + $0x140] sm:$0xff]  ;;  %959 = vmatprep.subr.bf16.mxu0 %v2117_v3  ;;  %v2111_v14 = vcombine.high %v233_v11, %v237_v12  ;;  %v225_v16 = vld [vmem:[#allocation5 + $0x148] sm:$0xff]  ;;  %1000 = vmatprep.subr.bf16.mxu1 %v2119_v8  ;;  %v2108_v18 = vcombine.low %v232_v6, %v236_v7 }
  0x21   :  { %v228_v15 = vld [vmem:[#allocation5 + $0x160] sm:$0xff]  ;;  %v229_v17 = vld [vmem:[#allocation5 + $0x168] sm:$0xff]  ;;  %960 = vmatpush1.bf16.msra.mxu0 %v2116_v5  ;;  %1001 = vmatpush1.bf16.msra.mxu1 %v2118_v9  ;;  %v2110_v19 = vcombine.low %v233_v11, %v237_v12  ;;  %p2412_p13 = por %p2411_p12, %p2410_p11 }
  0x22   :  { %961 = vmatprep.subr.bf16.mxu0 %v2109_v10  ;;  %v2101_v20 = vcombine.high %v224_v13, %v228_v15  ;;  %1002 = vmatprep.subr.bf16.mxu1 %v2111_v14  ;;  %v2103_v21 = vcombine.high %v225_v16, %v229_v17  ;;  %v216_v22 = vld [vmem:[#allocation5 + $0x100] sm:$0xff]  ;;  %v217_v24 = vld [vmem:[#allocation5 + $0x108] sm:$0xff]  ;;  %v2100_v26 = vcombine.low %v224_v13, %v228_v15 }
  0x23   :  { %v220_v23 = vld [vmem:[#allocation5 + $0x120] sm:$0xff]  ;;  %v221_v25 = vld [vmem:[#allocation5 + $0x128] sm:$0xff]  ;;  %v2102_v27 = vcombine.low %v225_v16, %v229_v17  ;;  %p2413_p0 = pnand %p2412_p13, %p2406_p10 }
  0x24   :  { %v2093_v28 = vcombine.high %v216_v22, %v220_v23  ;;  %v2095_v29 = vcombine.high %v217_v24, %v221_v25  ;;  %v208_v30 = vld [vmem:[#allocation5 + $0xc0] sm:$0xff]  ;;  %v209_v32 = vld [vmem:[#allocation5 + $0xc8] sm:$0xff]  ;;  %v2092_v34 = vcombine.low %v216_v22, %v220_v23  ;;  %v2094_v35 = vcombine.low %v217_v24, %v221_v25 }
  0x25   :  { %962 = vmatpush1.bf16.msra.mxu0 %v2108_v18  ;;  %1003 = vmatpush1.bf16.msra.mxu1 %v2110_v19  ;;  %v212_v31 = vld [vmem:[#allocation5 + $0xe0] sm:$0xff]  ;;  %v213_v33 = vld [vmem:[#allocation5 + $0xe8] sm:$0xff] }
  0x26   :  { %963 = vmatprep.subr.bf16.mxu0 %v2101_v20  ;;  %1004 = vmatprep.subr.bf16.mxu1 %v2103_v21  ;;  %v2085_v36 = vcombine.high %v208_v30, %v212_v31  ;;  %v2087_v37 = vcombine.high %v209_v32, %v213_v33  ;;  %v200_v38 = vld [vmem:[#allocation5 + $0x80] sm:$0xff]  ;;  %v201_v40 = vld [vmem:[#allocation5 + $0x88] sm:$0xff]  ;;  %v2084_v42 = vcombine.low %v208_v30, %v212_v31 }
  0x27   :  { %v204_v39 = vld [vmem:[#allocation5 + $0xa0] sm:$0xff]  ;;  %v205_v41 = vld [vmem:[#allocation5 + $0xa8] sm:$0xff]  ;;  %v2086_v43 = vcombine.low %v209_v32, %v213_v33 }
  0x28   :  { %v2077_v44 = vcombine.high %v200_v38, %v204_v39  ;;  %v2079_v45 = vcombine.high %v201_v40, %v205_v41  ;;  %v192_v46 = vld [vmem:[#allocation5 + $0x40] sm:$0xff]  ;;  %v193_v48 = vld [vmem:[#allocation5 + $0x48] sm:$0xff]  ;;  %v2076_v50 = vcombine.low %v200_v38, %v204_v39  ;;  %v2078_v51 = vcombine.low %v201_v40, %v205_v41 }
  0x29   :  { %964 = vmatpush1.bf16.msra.mxu0 %v2100_v26  ;;  %1005 = vmatpush1.bf16.msra.mxu1 %v2102_v27  ;;  %v196_v47 = vld [vmem:[#allocation5 + $0x60] sm:$0xff]  ;;  %v197_v49 = vld [vmem:[#allocation5 + $0x68] sm:$0xff] }
  0x2a   :  { %965 = vmatprep.subr.bf16.mxu0 %v2093_v28  ;;  %1006 = vmatprep.subr.bf16.mxu1 %v2095_v29  ;;  %v2069_v52 = vcombine.high %v192_v46, %v196_v47  ;;  %v2485_v53 = vld [vmem:[%s2569_s1] sm:$0xff]  ;;  %v2071_v54 = vcombine.high %v193_v48, %v197_v49  ;;  %v185_v58 = vld [vmem:[#allocation5 + $0x8] sm:$0xff]  ;;  %v2068_v60 = vcombine.low %v192_v46, %v196_v47 }
  0x2b   :  { %v184_v55 = vld [vmem:[#allocation5] sm:$0xff]  ;;  %v2489_v57 = vcombine.high %v2485_v53, %v2485_v53  ;;  %v189_v59 = vld [vmem:[#allocation5 + $0x28] sm:$0xff]  ;;  %v2070_v61 = vcombine.low %v193_v48, %v197_v49 }
  0x2c   :  { %v188_v56 = vld [vmem:[#allocation5 + $0x20] sm:$0xff]  ;;  %v2063_v63 = vcombine.high %v185_v58, %v189_v59  ;;  %v305_v2 = vld [vmem:[#allocation5 + $0x3c8] sm:$0xff]  ;;  %v2062_v5 = vcombine.low %v185_v58, %v189_v59 }
  0x2d   :  { %966 = vmatpush1.bf16.msra.mxu0 %v2092_v34  ;;  %1007 = vmatpush1.bf16.msra.mxu1 %v2094_v35  ;;  %v2061_v62 = vcombine.high %v184_v55, %v188_v56  ;;  %v304_v0 = vld [vmem:[#allocation5 + $0x3c0] sm:$0xff]  ;;  %v309_v3 = vld [vmem:[#allocation5 + $0x3e8] sm:$0xff]  ;;  %v2060_v4 = vcombine.low %v184_v55, %v188_v56 }
  0x2e   :  { %967 = vmatprep.subr.bf16.mxu0 %v2085_v36  ;;  %1008 = vmatprep.subr.bf16.mxu1 %v2087_v37  ;;  %v308_v1 = vld [vmem:[#allocation5 + $0x3e0] sm:$0xff]  ;;  %v2183_v7 = vcombine.high %v305_v2, %v309_v3  ;;  %v297_v10 = vld [vmem:[#allocation5 + $0x388] sm:$0xff]  ;;  %v2182_v13 = vcombine.low %v305_v2, %v309_v3  ;;  %v242_v2 = vld [vmem:[#allocation5 + $0x1d0] sm:$0xff] }
  0x2f   :  { %991 = vmatprep.mubr.bf16.mxu0 %v2489_v57  ;;  %1032 = vmatprep.mubr.bf16.mxu1 %v2489_v57  ;;  %v2181_v6 = vcombine.high %v304_v0, %v308_v1  ;;  %v296_v8 = vld [vmem:[#allocation5 + $0x380] sm:$0xff]  ;;  %v301_v11 = vld [vmem:[#allocation5 + $0x3a8] sm:$0xff]  ;;  %v2180_v12 = vcombine.low %v304_v0, %v308_v1  ;;  %v246_v3 = vld [vmem:[#allocation5 + $0x1f0] sm:$0xff] }
  0x30   :  { %v300_v9 = vld [vmem:[#allocation5 + $0x3a0] sm:$0xff]  ;;  %v2175_v15 = vcombine.high %v297_v10, %v301_v11  ;;  %v289_v18 = vld [vmem:[#allocation5 + $0x348] sm:$0xff]  ;;  %v2174_v21 = vcombine.low %v297_v10, %v301_v11  ;;  %v234_v10 = vld [vmem:[#allocation5 + $0x190] sm:$0xff] }
  0x31   :  { %968 = vmatpush1.bf16.msra.mxu0 %v2084_v42  ;;  %1009 = vmatpush1.bf16.msra.mxu1 %v2086_v43  ;;  %v2173_v14 = vcombine.high %v296_v8, %v300_v9  ;;  %v288_v16 = vld [vmem:[#allocation5 + $0x340] sm:$0xff]  ;;  %v293_v19 = vld [vmem:[#allocation5 + $0x368] sm:$0xff]  ;;  %v2172_v20 = vcombine.low %v296_v8, %v300_v9  ;;  %v2121_v8 = vcombine.high %v242_v2, %v246_v3  ;;  %v238_v11 = vld [vmem:[#allocation5 + $0x1b0] sm:$0xff] }
  0x32   :  { %969 = vmatprep.subr.bf16.mxu0 %v2077_v44  ;;  %1010 = vmatprep.subr.bf16.mxu1 %v2079_v45  ;;  %v292_v17 = vld [vmem:[#allocation5 + $0x360] sm:$0xff]  ;;  %v2167_v23 = vcombine.high %v289_v18, %v293_v19  ;;  %v281_v26 = vld [vmem:[#allocation5 + $0x308] sm:$0xff]  ;;  %v2166_v29 = vcombine.low %v289_v18, %v293_v19  ;;  %v226_v19 = vld [vmem:[#allocation5 + $0x150] sm:$0xff] }
  0x33   :  { %v2165_v22 = vcombine.high %v288_v16, %v292_v17  ;;  %v280_v24 = vld [vmem:[#allocation5 + $0x300] sm:$0xff]  ;;  %v285_v27 = vld [vmem:[#allocation5 + $0x328] sm:$0xff]  ;;  %v2164_v28 = vcombine.low %v288_v16, %v292_v17  ;;  %v2113_v17 = vcombine.high %v234_v10, %v238_v11 }
  0x34   :  { %v284_v25 = vld [vmem:[#allocation5 + $0x320] sm:$0xff]  ;;  %v2159_v31 = vcombine.high %v281_v26, %v285_v27  ;;  %v273_v34 = vld [vmem:[#allocation5 + $0x2c8] sm:$0xff]  ;;  %v2158_v37 = vcombine.low %v281_v26, %v285_v27  ;;  %v218_v26 = vld [vmem:[#allocation5 + $0x110] sm:$0xff] }
  0x35   :  { %970 = vmatpush1.bf16.msra.mxu0 %v2076_v50  ;;  %1011 = vmatpush1.bf16.msra.mxu1 %v2078_v51  ;;  %v2157_v30 = vcombine.high %v280_v24, %v284_v25  ;;  %v272_v32 = vld [vmem:[#allocation5 + $0x2c0] sm:$0xff]  ;;  %v277_v35 = vld [vmem:[#allocation5 + $0x2e8] sm:$0xff]  ;;  %v2156_v36 = vcombine.low %v280_v24, %v284_v25  ;;  %v222_v27 = vld [vmem:[#allocation5 + $0x130] sm:$0xff] }
  0x36   :  { %971 = vmatprep.subr.bf16.mxu0 %v2069_v52  ;;  %1012 = vmatprep.subr.bf16.mxu1 %v2071_v54  ;;  %v276_v33 = vld [vmem:[#allocation5 + $0x2e0] sm:$0xff]  ;;  %v2151_v39 = vcombine.high %v273_v34, %v277_v35  ;;  %v265_v42 = vld [vmem:[#allocation5 + $0x288] sm:$0xff]  ;;  %v2150_v45 = vcombine.low %v273_v34, %v277_v35  ;;  %v210_v34 = vld [vmem:[#allocation5 + $0xd0] sm:$0xff] }
  0x37   :  { %v2149_v38 = vcombine.high %v272_v32, %v276_v33  ;;  %v264_v40 = vld [vmem:[#allocation5 + $0x280] sm:$0xff]  ;;  %v269_v43 = vld [vmem:[#allocation5 + $0x2a8] sm:$0xff]  ;;  %v2148_v44 = vcombine.low %v272_v32, %v276_v33  ;;  %v2097_v32 = vcombine.high %v218_v26, %v222_v27  ;;  %v214_v35 = vld [vmem:[#allocation5 + $0xf0] sm:$0xff] }
  0x38   :  { %v268_v41 = vld [vmem:[#allocation5 + $0x2a0] sm:$0xff]  ;;  %v2143_v47 = vcombine.high %v265_v42, %v269_v43  ;;  %v257_v50 = vld [vmem:[#allocation5 + $0x248] sm:$0xff]  ;;  %v2142_v54 = vcombine.low %v265_v42, %v269_v43  ;;  %v206_v42 = vld [vmem:[#allocation5 + $0xb0] sm:$0xff] }
  0x39   :  { %972 = vmatpush1.bf16.msra.mxu0 %v2068_v60  ;;  %1013 = vmatpush1.bf16.msra.mxu1 %v2070_v61  ;;  %v2141_v46 = vcombine.high %v264_v40, %v268_v41  ;;  %v256_v48 = vld [vmem:[#allocation5 + $0x240] sm:$0xff]  ;;  %v261_v51 = vld [vmem:[#allocation5 + $0x268] sm:$0xff]  ;;  %v2140_v52 = vcombine.low %v264_v40, %v268_v41  ;;  %v2089_v40 = vcombine.high %v210_v34, %v214_v35  ;;  %v202_v41 = vld [vmem:[#allocation5 + $0x90] sm:$0xff] }
  0x3a   :  { %973 = vmatprep.subr.bf16.mxu0 %v2061_v62  ;;  %1014 = vmatprep.subr.bf16.mxu1 %v2063_v63  ;;  %v260_v49 = vld [vmem:[#allocation5 + $0x260] sm:$0xff]  ;;  %v2135_v56 = vcombine.high %v257_v50, %v261_v51  ;;  %v249_v60 = vld [vmem:[#allocation5 + $0x208] sm:$0xff]  ;;  %v2134_v63 = vcombine.low %v257_v50, %v261_v51  ;;  %v203_v43 = vld [vmem:[#allocation5 + $0x98] sm:$0xff] }
  0x3b   :  { %v2133_v55 = vcombine.high %v256_v48, %v260_v49  ;;  %v248_v58 = vld [vmem:[#allocation5 + $0x200] sm:$0xff]  ;;  %v253_v61 = vld [vmem:[#allocation5 + $0x228] sm:$0xff]  ;;  %v2132_v62 = vcombine.low %v256_v48, %v260_v49  ;;  %v194_v49 = vld [vmem:[#allocation5 + $0x50] sm:$0xff] }
  0x3c   :  { %v252_v59 = vld [vmem:[#allocation5 + $0x220] sm:$0xff]  ;;  %v2127_v1 = vcombine.high %v249_v60, %v253_v61  ;;  %v198_v50 = vld [vmem:[#allocation5 + $0x70] sm:$0xff]  ;;  %v195_v51 = vld [vmem:[#allocation5 + $0x58] sm:$0xff] }
  0x3d   :  { %974 = vmatpush1.bf16.msra.mxu0 %v2060_v4  ;;  %1015 = vmatpush1.bf16.msra.mxu1 %v2062_v5  ;;  %v2125_v0 = vcombine.high %v248_v58, %v252_v59  ;;  %v243_v4 = vld [vmem:[#allocation5 + $0x1d8] sm:$0xff] }
  0x3e   :  { %975 = vmatprep.subr.bf16.mxu0 %v2181_v6  ;;  %1016 = vmatprep.subr.bf16.mxu1 %v2183_v7  ;;  %v247_v5 = vld [vmem:[#allocation5 + $0x1f8] sm:$0xff]  ;;  %v2124_v6 = vcombine.low %v248_v58, %v252_v59  ;;  %v2126_v7 = vcombine.low %v249_v60, %v253_v61  ;;  %v186_v59 = vld [vmem:[#allocation5 + $0x10] sm:$0xff] }
  0x3f   :  { %v2123_v9 = vcombine.high %v243_v4, %v247_v5  ;;  %v2122_v16 = vcombine.low %v243_v4, %v247_v5  ;;  %v190_v60 = vld [vmem:[#allocation5 + $0x30] sm:$0xff]  ;;  %v187_v61 = vld [vmem:[#allocation5 + $0x18] sm:$0xff] }
  0x40   :  { %v310_v4 = vld [vmem:[#allocation5 + $0x3f0] sm:$0xff]  ;;  %v307_v5 = vld [vmem:[#allocation5 + $0x3d8] sm:$0xff] }
  0x41   :  { %976 = vmatpush2.bf16.msra.mxu0 %v2180_v12  ;;  %1017 = vmatpush2.bf16.msra.mxu1 %v2182_v13  ;;  %v2495_v12 = vcombine.low %v2485_v53, %v2485_v53  ;;  %v235_v13 = vld [vmem:[#allocation5 + $0x198] sm:$0xff]  ;;  %v2112_v53 = vcombine.low %v234_v10, %v238_v11  ;;  %v298_v11 = vld [vmem:[#allocation5 + $0x390] sm:$0xff] }
  0x42   :  { %977 = vmatprep.subr.bf16.mxu0 %v2173_v14  ;;  %1018 = vmatprep.subr.bf16.mxu1 %v2175_v15  ;;  %v239_v14 = vld [vmem:[#allocation5 + $0x1b8] sm:$0xff]  ;;  %v2120_v15 = vcombine.low %v242_v2, %v246_v3  ;;  %v306_v3 = vld [vmem:[#allocation5 + $0x3d0] sm:$0xff] }
  0x43   :  { %v2115_v18 = vcombine.high %v235_v13, %v239_v14 }
  0x45   :  { %978 = vmatpush2.bf16.msra.mxu0 %v2172_v20  ;;  %1019 = vmatpush2.bf16.msra.mxu1 %v2174_v21  ;;  %v230_v20 = vld [vmem:[#allocation5 + $0x170] sm:$0xff]  ;;  %v227_v21 = vld [vmem:[#allocation5 + $0x158] sm:$0xff] }
  0x46   :  { %979 = vmatprep.subr.bf16.mxu0 %v2165_v22  ;;  %1020 = vmatprep.subr.bf16.mxu1 %v2167_v23  ;;  %v231_v22 = vld [vmem:[#allocation5 + $0x178] sm:$0xff]  ;;  %v2114_v23 = vcombine.low %v235_v13, %v239_v14  ;;  %v2105_v24 = vcombine.high %v226_v19, %v230_v20  ;;  %v302_v13 = vld [vmem:[#allocation5 + $0x3b0] sm:$0xff] }
  0x47   :  { %v2107_v25 = vcombine.high %v227_v21, %v231_v22  ;;  %v299_v14 = vld [vmem:[#allocation5 + $0x398] sm:$0xff] }
  0x49   :  { %980 = vmatpush2.bf16.msra.mxu0 %v2164_v28  ;;  %1021 = vmatpush2.bf16.msra.mxu1 %v2166_v29  ;;  %v219_v28 = vld [vmem:[#allocation5 + $0x118] sm:$0xff] }
  0x4a   :  { %981 = vmatprep.subr.bf16.mxu0 %v2157_v30  ;;  %1022 = vmatprep.subr.bf16.mxu1 %v2159_v31  ;;  %v223_v29 = vld [vmem:[#allocation5 + $0x138] sm:$0xff]  ;;  %v2104_v30 = vcombine.low %v226_v19, %v230_v20  ;;  %v2106_v31 = vcombine.low %v227_v21, %v231_v22  ;;  %v290_v20 = vld [vmem:[#allocation5 + $0x350] sm:$0xff] }
  0x4b   :  { %v2099_v33 = vcombine.high %v219_v28, %v223_v29  ;;  %v294_v21 = vld [vmem:[#allocation5 + $0x370] sm:$0xff]  ;;  %v291_v22 = vld [vmem:[#allocation5 + $0x358] sm:$0xff] }
  0x4d   :  { %982 = vmatpush2.bf16.msra.mxu0 %v2156_v36  ;;  %1023 = vmatpush2.bf16.msra.mxu1 %v2158_v37  ;;  %v211_v36 = vld [vmem:[#allocation5 + $0xd8] sm:$0xff] }
  0x4e   :  { %983 = vmatprep.subr.bf16.mxu0 %v2149_v38  ;;  %1024 = vmatprep.subr.bf16.mxu1 %v2151_v39  ;;  %v215_v37 = vld [vmem:[#allocation5 + $0xf8] sm:$0xff]  ;;  %v2096_v38 = vcombine.low %v218_v26, %v222_v27  ;;  %v2098_v39 = vcombine.low %v219_v28, %v223_v29  ;;  %v282_v27 = vld [vmem:[#allocation5 + $0x310] sm:$0xff] }
  0x4f   :  { %v286_v28 = vld [vmem:[#allocation5 + $0x330] sm:$0xff]  ;;  %v283_v29 = vld [vmem:[#allocation5 + $0x318] sm:$0xff] }
  0x51   :  { %984 = vmatpush2.bf16.msra.mxu0 %v2148_v44  ;;  %1025 = vmatpush2.bf16.msra.mxu1 %v2150_v45  ;;  %v207_v44 = vld [vmem:[#allocation5 + $0xb8] sm:$0xff]  ;;  %v2088_v45 = vcombine.low %v210_v34, %v214_v35  ;;  %v274_v35 = vld [vmem:[#allocation5 + $0x2d0] sm:$0xff] }
  0x52   :  { %985 = vmatprep.subr.bf16.mxu0 %v2141_v46  ;;  %1026 = vmatprep.subr.bf16.mxu1 %v2143_v47  ;;  %v2090_v46 = vcombine.low %v211_v36, %v215_v37  ;;  %v2081_v47 = vcombine.high %v202_v41, %v206_v42  ;;  %v2083_v48 = vcombine.high %v203_v43, %v207_v44 }
  0x55   :  { %986 = vmatpush2.bf16.msra.mxu0 %v2140_v52  ;;  %1027 = vmatpush2.bf16.msra.mxu1 %v2142_v54  ;;  %v199_v52 = vld [vmem:[#allocation5 + $0x78] sm:$0xff]  ;;  %v2080_v54 = vcombine.low %v202_v41, %v206_v42  ;;  %v266_v42 = vld [vmem:[#allocation5 + $0x290] sm:$0xff] }
  0x56   :  { %987 = vmatprep.subr.bf16.mxu0 %v2133_v55  ;;  %1028 = vmatprep.subr.bf16.mxu1 %v2135_v56  ;;  %v2082_v55 = vcombine.low %v203_v43, %v207_v44  ;;  %v2073_v56 = vcombine.high %v194_v49, %v198_v50  ;;  %v2075_v58 = vcombine.high %v195_v51, %v199_v52  ;;  %v270_v43 = vld [vmem:[#allocation5 + $0x2b0] sm:$0xff]  ;;  %v267_v44 = vld [vmem:[#allocation5 + $0x298] sm:$0xff] }
  0x59   :  { %988 = vmatpush2.bf16.msra.mxu0 %v2132_v62  ;;  %1029 = vmatpush2.bf16.msra.mxu1 %v2134_v63  ;;  %v191_v62 = vld [vmem:[#allocation5 + $0x38] sm:$0xff]  ;;  %v2072_v63 = vcombine.low %v194_v49, %v198_v50  ;;  %v258_v50 = vld [vmem:[#allocation5 + $0x250] sm:$0xff] }
  0x5a   :  { %989 = vmatprep.subr.bf16.mxu0 %v2125_v0  ;;  %1030 = vmatprep.subr.bf16.mxu1 %v2127_v1  ;;  %v2074_v0 = vcombine.low %v195_v51, %v199_v52  ;;  %v2065_v1 = vcombine.high %v186_v59, %v190_v60  ;;  %v2067_v2 = vcombine.high %v187_v61, %v191_v62  ;;  %v262_v51 = vld [vmem:[#allocation5 + $0x270] sm:$0xff]  ;;  %v259_v52 = vld [vmem:[#allocation5 + $0x258] sm:$0xff] }
  0x5d   :  { %990 = vmatpush2.bf16.msra.mxu0 %v2124_v6  ;;  %1031 = vmatpush2.bf16.msra.mxu1 %v2126_v7  ;;  %v311_v6 = vld [vmem:[#allocation5 + $0x3f8] sm:$0xff]  ;;  %v2064_v7 = vcombine.low %v186_v59, %v190_v60  ;;  %v250_v60 = vld [vmem:[#allocation5 + $0x210] sm:$0xff] }
  0x5e   :  { %1041 = vmatprep.subr.bf16.mxu0 %v2121_v8  ;;  %1082 = vmatprep.subr.bf16.mxu1 %v2123_v9  ;;  %v2066_v8 = vcombine.low %v187_v61, %v191_v62  ;;  %v2185_v9 = vcombine.high %v306_v3, %v310_v4  ;;  %v2187_v10 = vcombine.high %v307_v5, %v311_v6  ;;  %v254_v61 = vld [vmem:[#allocation5 + $0x230] sm:$0xff]  ;;  %v251_v62 = vld [vmem:[#allocation5 + $0x218] sm:$0xff] }
  0x60   :  { %992 = vmatmul.mubr.bf16.vlgmr.msra.gmra.mxu0 %v2495_v12  ;;  %1033 = vmatmul.mubr.bf16.vlgmr.msra.gmra.mxu1 %v2495_v12 }
  0x61   :  { %1042 = vmatpush1.bf16.msra.mxu0 %v2120_v15  ;;  %1083 = vmatpush1.bf16.msra.mxu1 %v2122_v16  ;;  %v303_v15 = vld [vmem:[#allocation5 + $0x3b8] sm:$0xff]  ;;  %v2184_v16 = vcombine.low %v306_v3, %v310_v4  ;;  %v111_v4 = vld [vmem:[#allocation2 + $0x1c0] sm:$0xff] }
  0x62   :  { %1043 = vmatprep.subr.bf16.mxu0 %v2113_v17  ;;  %1084 = vmatprep.subr.bf16.mxu1 %v2115_v18  ;;  %v2186_v17 = vcombine.low %v307_v5, %v311_v6  ;;  %v2177_v18 = vcombine.high %v298_v11, %v302_v13  ;;  %v2179_v19 = vcombine.high %v299_v14, %v303_v15  ;;  %v115_v5 = vld [vmem:[#allocation2 + $0x1e0] sm:$0xff]  ;;  %v112_v6 = vld [vmem:[#allocation2 + $0x1c8] sm:$0xff] }
  0x63   :  { %1073 = vmatprep.mubr.bf16.mxu0 %v2489_v57  ;;  %1114 = vmatprep.mubr.bf16.mxu1 %v2489_v57  ;;  %v2091_v57 = vcombine.high %v211_v36, %v215_v37  ;;  %v278_v36 = vld [vmem:[#allocation5 + $0x2f0] sm:$0xff]  ;;  %v275_v37 = vld [vmem:[#allocation5 + $0x2d8] sm:$0xff] }
  0x65   :  { %1044 = vmatpush1.bf16.msra.mxu0 %v2112_v53  ;;  %1085 = vmatpush1.bf16.msra.mxu1 %v2114_v23  ;;  %v295_v53 = vld [vmem:[#allocation5 + $0x378] sm:$0xff]  ;;  %v2176_v23 = vcombine.low %v298_v11, %v302_v13  ;;  %v103_v13 = vld [vmem:[#allocation2 + $0x180] sm:$0xff] }
  0x66   :  { %1045 = vmatprep.subr.bf16.mxu0 %v2105_v24  ;;  %1086 = vmatprep.subr.bf16.mxu1 %v2107_v25  ;;  %v2178_v24 = vcombine.low %v299_v14, %v303_v15  ;;  %v2169_v25 = vcombine.high %v290_v20, %v294_v21  ;;  %v2171_v26 = vcombine.high %v291_v22, %v295_v53  ;;  %v107_v14 = vld [vmem:[#allocation2 + $0x1a0] sm:$0xff]  ;;  %v104_v15 = vld [vmem:[#allocation2 + $0x188] sm:$0xff] }
  0x69   :  { %1046 = vmatpush1.bf16.msra.mxu0 %v2104_v30  ;;  %1087 = vmatpush1.bf16.msra.mxu1 %v2106_v31  ;;  %v287_v30 = vld [vmem:[#allocation5 + $0x338] sm:$0xff]  ;;  %v2168_v31 = vcombine.low %v290_v20, %v294_v21  ;;  %v2239_v20 = vcombine.high %v103_v13, %v107_v14 }
  0x6a   :  { %1047 = vmatprep.subr.bf16.mxu0 %v2097_v32  ;;  %1088 = vmatprep.subr.bf16.mxu1 %v2099_v33  ;;  %v2170_v32 = vcombine.low %v291_v22, %v295_v53  ;;  %v2161_v33 = vcombine.high %v282_v27, %v286_v28  ;;  %v2163_v34 = vcombine.high %v283_v29, %v287_v30  ;;  %v95_v22 = vld [vmem:[#allocation2 + $0x140] sm:$0xff] }
  0x6b   :  { %v99_v53 = vld [vmem:[#allocation2 + $0x160] sm:$0xff] }
  0x6d   :  { %1048 = vmatpush1.bf16.msra.mxu0 %v2096_v38  ;;  %1089 = vmatpush1.bf16.msra.mxu1 %v2098_v39  ;;  %v279_v38 = vld [vmem:[#allocation5 + $0x2f8] sm:$0xff]  ;;  %v2160_v39 = vcombine.low %v282_v27, %v286_v28  ;;  %v2231_v28 = vcombine.high %v95_v22, %v99_v53 }
  0x6e   :  { %1049 = vmatprep.subr.bf16.mxu0 %v2089_v40  ;;  %1090 = vmatprep.subr.bf16.mxu1 %v2091_v57  ;;  %v2162_v40 = vcombine.low %v283_v29, %v287_v30  ;;  %v2153_v57 = vcombine.high %v274_v35, %v278_v36  ;;  %v2155_v41 = vcombine.high %v275_v37, %v279_v38  ;;  %v87_v30 = vld [vmem:[#allocation2 + $0x100] sm:$0xff] }
  0x71   :  { %1050 = vmatpush1.bf16.msra.mxu0 %v2088_v45  ;;  %1091 = vmatpush1.bf16.msra.mxu1 %v2090_v46  ;;  %v271_v45 = vld [vmem:[#allocation5 + $0x2b8] sm:$0xff]  ;;  %v2152_v46 = vcombine.low %v274_v35, %v278_v36 }
  0x72   :  { %1051 = vmatprep.subr.bf16.mxu0 %v2081_v47  ;;  %1092 = vmatprep.subr.bf16.mxu1 %v2083_v48  ;;  %v2154_v47 = vcombine.low %v275_v37, %v279_v38  ;;  %v2145_v48 = vcombine.high %v266_v42, %v270_v43  ;;  %v2147_v49 = vcombine.high %v267_v44, %v271_v45  ;;  %v79_v37 = vld [vmem:[#allocation2 + $0xc0] sm:$0xff] }
  0x73   :  { %v83_v38 = vld [vmem:[#allocation2 + $0xe0] sm:$0xff] }
  0x75   :  { %1052 = vmatpush1.bf16.msra.mxu0 %v2080_v54  ;;  %1093 = vmatpush1.bf16.msra.mxu1 %v2082_v55  ;;  %v263_v54 = vld [vmem:[#allocation5 + $0x278] sm:$0xff]  ;;  %v2144_v55 = vcombine.low %v266_v42, %v270_v43  ;;  %v2215_v42 = vcombine.high %v79_v37, %v83_v38 }
  0x76   :  { %1053 = vmatprep.subr.bf16.mxu0 %v2073_v56  ;;  %1094 = vmatprep.subr.bf16.mxu1 %v2075_v58  ;;  %v2146_v56 = vcombine.low %v267_v44, %v271_v45  ;;  %v2137_v58 = vcombine.high %v258_v50, %v262_v51  ;;  %v2139_v59 = vcombine.high %v259_v52, %v263_v54  ;;  %v71_v44 = vld [vmem:[#allocation2 + $0x80] sm:$0xff] }
  0x77   :  { %v75_v45 = vld [vmem:[#allocation2 + $0xa0] sm:$0xff] }
  0x79   :  { %1054 = vmatpush1.bf16.msra.mxu0 %v2072_v63  ;;  %1095 = vmatpush1.bf16.msra.mxu1 %v2074_v0  ;;  %v255_v63 = vld [vmem:[#allocation5 + $0x238] sm:$0xff]  ;;  %v2136_v0 = vcombine.low %v258_v50, %v262_v51  ;;  %v2207_v50 = vcombine.high %v71_v44, %v75_v45 }
  0x7a   :  { %1055 = vmatprep.subr.bf16.mxu0 %v2065_v1  ;;  %1096 = vmatprep.subr.bf16.mxu1 %v2067_v2  ;;  %v2138_v1 = vcombine.low %v259_v52, %v263_v54  ;;  %v2129_v2 = vcombine.high %v250_v60, %v254_v61  ;;  %v2131_v3 = vcombine.high %v251_v62, %v255_v63  ;;  %v63_v52 = vld [vmem:[#allocation2 + $0x40] sm:$0xff] }
  0x7b   :  { %v67_v54 = vld [vmem:[#allocation2 + $0x60] sm:$0xff] }
  0x7d   :  { %1056 = vmatpush1.bf16.msra.mxu0 %v2064_v7  ;;  %1097 = vmatpush1.bf16.msra.mxu1 %v2066_v8  ;;  %v116_v7 = vld [vmem:[#allocation2 + $0x1e8] sm:$0xff]  ;;  %v2128_v8 = vcombine.low %v250_v60, %v254_v61  ;;  %v2199_v60 = vcombine.high %v63_v52, %v67_v54 }
  0x7e   :  { %1057 = vmatprep.subr.bf16.mxu0 %v2185_v9  ;;  %1098 = vmatprep.subr.bf16.mxu1 %v2187_v10  ;;  %v2130_v9 = vcombine.low %v251_v62, %v255_v63  ;;  %v2247_v10 = vcombine.high %v111_v4, %v115_v5  ;;  %v2249_v11 = vcombine.high %v112_v6, %v116_v7  ;;  %v55_v62 = vld [vmem:[#allocation2] sm:$0xff] }
  0x7f   :  { %v59_v63 = vld [vmem:[#allocation2 + $0x20] sm:$0xff] }
  0x81   :  { %1058 = vmatpush2.bf16.msra.mxu0 %v2184_v16  ;;  %1099 = vmatpush2.bf16.msra.mxu1 %v2186_v17  ;;  %v108_v16 = vld [vmem:[#allocation2 + $0x1a8] sm:$0xff]  ;;  %v2504_v17 = vld [vmem:[%s2568_s0] sm:$0xff] }
  0x82   :  { %1059 = vmatprep.subr.bf16.mxu0 %v2177_v18  ;;  %1100 = vmatprep.subr.bf16.mxu1 %v2179_v19  ;;  %v2246_v18 = vcombine.low %v111_v4, %v115_v5  ;;  %v2248_v19 = vcombine.low %v112_v6, %v116_v7  ;;  %v2241_v21 = vcombine.high %v104_v15, %v108_v16  ;;  %v175_v6 = vld [vmem:[#allocation2 + $0x3c0] sm:$0xff] }
  0x83   :  { %v2240_v27 = vcombine.low %v104_v15, %v108_v16  ;;  %v2191_v4 = vcombine.high %v55_v62, %v59_v63  ;;  %v179_v7 = vld [vmem:[#allocation2 + $0x3e0] sm:$0xff] }
  0x84   :  { %v167_v15 = vld [vmem:[#allocation2 + $0x380] sm:$0xff] }
  0x85   :  { %1060 = vmatpush2.bf16.msra.mxu0 %v2176_v23  ;;  %1101 = vmatpush2.bf16.msra.mxu1 %v2178_v24  ;;  %v2508_v23 = vcombine.high %v2504_v17, %v2504_v17  ;;  %v96_v24 = vld [vmem:[#allocation2 + $0x148] sm:$0xff]  ;;  %v171_v16 = vld [vmem:[#allocation2 + $0x3a0] sm:$0xff] }
  0x86   :  { %1061 = vmatprep.subr.bf16.mxu0 %v2169_v25  ;;  %1102 = vmatprep.subr.bf16.mxu1 %v2171_v26  ;;  %v100_v25 = vld [vmem:[#allocation2 + $0x168] sm:$0xff]  ;;  %v2238_v26 = vcombine.low %v103_v13, %v107_v14  ;;  %v2311_v13 = vcombine.high %v175_v6, %v179_v7 }
  0x87   :  { %v2233_v29 = vcombine.high %v96_v24, %v100_v25 }
  0x89   :  { %1062 = vmatpush2.bf16.msra.mxu0 %v2168_v31  ;;  %1103 = vmatpush2.bf16.msra.mxu1 %v2170_v32  ;;  %v91_v31 = vld [vmem:[#allocation2 + $0x120] sm:$0xff]  ;;  %v88_v32 = vld [vmem:[#allocation2 + $0x108] sm:$0xff] }
  0x8a   :  { %1063 = vmatprep.subr.bf16.mxu0 %v2161_v33  ;;  %1104 = vmatprep.subr.bf16.mxu1 %v2163_v34  ;;  %v92_v33 = vld [vmem:[#allocation2 + $0x128] sm:$0xff]  ;;  %v2230_v34 = vcombine.low %v95_v22, %v99_v53  ;;  %v2223_v35 = vcombine.high %v87_v30, %v91_v31  ;;  %v2303_v22 = vcombine.high %v167_v15, %v171_v16 }
  0x8b   :  { %v2225_v36 = vcombine.high %v88_v32, %v92_v33 }
  0x8d   :  { %1064 = vmatpush2.bf16.msra.mxu0 %v2160_v39  ;;  %1105 = vmatpush2.bf16.msra.mxu1 %v2162_v40  ;;  %v80_v39 = vld [vmem:[#allocation2 + $0xc8] sm:$0xff] }
  0x8e   :  { %1065 = vmatprep.subr.bf16.mxu0 %v2153_v57  ;;  %1106 = vmatprep.subr.bf16.mxu1 %v2155_v41  ;;  %v84_v40 = vld [vmem:[#allocation2 + $0xe8] sm:$0xff]  ;;  %v2222_v57 = vcombine.low %v87_v30, %v91_v31  ;;  %v2224_v41 = vcombine.low %v88_v32, %v92_v33  ;;  %v151_v32 = vld [vmem:[#allocation2 + $0x300] sm:$0xff] }
  0x8f   :  { %v2217_v43 = vcombine.high %v80_v39, %v84_v40  ;;  %v155_v33 = vld [vmem:[#allocation2 + $0x320] sm:$0xff] }
  0x91   :  { %1066 = vmatpush2.bf16.msra.mxu0 %v2152_v46  ;;  %1107 = vmatpush2.bf16.msra.mxu1 %v2154_v47  ;;  %v72_v46 = vld [vmem:[#allocation2 + $0x88] sm:$0xff] }
  0x92   :  { %1067 = vmatprep.subr.bf16.mxu0 %v2145_v48  ;;  %1108 = vmatprep.subr.bf16.mxu1 %v2147_v49  ;;  %v76_v47 = vld [vmem:[#allocation2 + $0xa8] sm:$0xff]  ;;  %v2214_v48 = vcombine.low %v79_v37, %v83_v38  ;;  %v2216_v49 = vcombine.low %v80_v39, %v84_v40  ;;  %v2287_v37 = vcombine.high %v151_v32, %v155_v33  ;;  %v143_v39 = vld [vmem:[#allocation2 + $0x2c0] sm:$0xff] }
  0x93   :  { %v2209_v51 = vcombine.high %v72_v46, %v76_v47  ;;  %v147_v40 = vld [vmem:[#allocation2 + $0x2e0] sm:$0xff] }
  0x95   :  { %1068 = vmatpush2.bf16.msra.mxu0 %v2144_v55  ;;  %1109 = vmatpush2.bf16.msra.mxu1 %v2146_v56  ;;  %v64_v55 = vld [vmem:[#allocation2 + $0x48] sm:$0xff] }
  0x96   :  { %1069 = vmatprep.subr.bf16.mxu0 %v2137_v58  ;;  %1110 = vmatprep.subr.bf16.mxu1 %v2139_v59  ;;  %v68_v56 = vld [vmem:[#allocation2 + $0x68] sm:$0xff]  ;;  %v2206_v58 = vcombine.low %v71_v44, %v75_v45  ;;  %v2208_v59 = vcombine.low %v72_v46, %v76_v47  ;;  %v2279_v44 = vcombine.high %v143_v39, %v147_v40  ;;  %v135_v46 = vld [vmem:[#allocation2 + $0x280] sm:$0xff] }
  0x97   :  { %v2201_v61 = vcombine.high %v64_v55, %v68_v56  ;;  %v139_v47 = vld [vmem:[#allocation2 + $0x2a0] sm:$0xff] }
  0x99   :  { %1070 = vmatpush2.bf16.msra.mxu0 %v2136_v0  ;;  %1111 = vmatpush2.bf16.msra.mxu1 %v2138_v1  ;;  %v56_v0 = vld [vmem:[#allocation2 + $0x8] sm:$0xff] }
  0x9a   :  { %1071 = vmatprep.subr.bf16.mxu0 %v2129_v2  ;;  %1112 = vmatprep.subr.bf16.mxu1 %v2131_v3  ;;  %v60_v1 = vld [vmem:[#allocation2 + $0x28] sm:$0xff]  ;;  %v2198_v2 = vcombine.low %v63_v52, %v67_v54  ;;  %v2200_v3 = vcombine.low %v64_v55, %v68_v56  ;;  %v2271_v52 = vcombine.high %v135_v46, %v139_v47  ;;  %v127_v55 = vld [vmem:[#allocation2 + $0x240] sm:$0xff] }
  0x9b   :  { %v2193_v5 = vcombine.high %v56_v0, %v60_v1  ;;  %v131_v56 = vld [vmem:[#allocation2 + $0x260] sm:$0xff] }
  0x9d   :  { %1072 = vmatpush2.bf16.msra.mxu0 %v2128_v8  ;;  %1113 = vmatpush2.bf16.msra.mxu1 %v2130_v9  ;;  %v176_v8 = vld [vmem:[#allocation2 + $0x3c8] sm:$0xff] }
  0x9e   :  { %1770 = vmatprep.subr.bf16.mxu0 %v2247_v10  ;;  %1811 = vmatprep.subr.bf16.mxu1 %v2249_v11  ;;  %v180_v9 = vld [vmem:[#allocation2 + $0x3e8] sm:$0xff]  ;;  %v2190_v10 = vcombine.low %v55_v62, %v59_v63  ;;  %v2192_v11 = vcombine.low %v56_v0, %v60_v1  ;;  %v2263_v62 = vcombine.high %v127_v55, %v131_v56  ;;  %v119_v0 = vld [vmem:[#allocation2 + $0x200] sm:$0xff] }
  0x9f   :  { %v2313_v14 = vcombine.high %v176_v8, %v180_v9  ;;  %v123_v1 = vld [vmem:[#allocation2 + $0x220] sm:$0xff] }
  0xa0   :  { %1074 = vmatmul.mubr.bf16.vlgmr.msra.gmra.mxu0 %v2495_v12  ;;  %1115 = vmatmul.mubr.bf16.vlgmr.msra.gmra.mxu1 %v2495_v12  ;;  %v2232_v12 = vcombine.low %v96_v24, %v100_v25  ;;  %v159_v24 = vld [vmem:[#allocation2 + $0x340] sm:$0xff] }
  0xa1   :  { %1771 = vmatpush1.bf16.msra.mxu0 %v2246_v18  ;;  %1812 = vmatpush1.bf16.msra.mxu1 %v2248_v19  ;;  %v168_v18 = vld [vmem:[#allocation2 + $0x388] sm:$0xff]  ;;  %v163_v25 = vld [vmem:[#allocation2 + $0x360] sm:$0xff] }
  0xa2   :  { %1772 = vmatprep.subr.bf16.mxu0 %v2239_v20  ;;  %1813 = vmatprep.subr.bf16.mxu1 %v2241_v21  ;;  %v172_v19 = vld [vmem:[#allocation2 + $0x3a8] sm:$0xff]  ;;  %v2310_v20 = vcombine.low %v175_v6, %v179_v7  ;;  %v2312_v21 = vcombine.low %v176_v8, %v180_v9  ;;  %v2295_v30 = vcombine.high %v159_v24, %v163_v25  ;;  %v113_v8 = vld [vmem:[#allocation2 + $0x1d0] sm:$0xff] }
  0xa3   :  { %1802 = vmatprep.mubr.bf16.mxu0 %v2508_v23  ;;  %1843 = vmatprep.mubr.bf16.mxu1 %v2508_v23  ;;  %v2305_v53 = vcombine.high %v168_v18, %v172_v19  ;;  %v2255_v6 = vcombine.high %v119_v0, %v123_v1  ;;  %v117_v9 = vld [vmem:[#allocation2 + $0x1f0] sm:$0xff] }
  0xa5   :  { %1773 = vmatpush1.bf16.msra.mxu0 %v2238_v26  ;;  %1814 = vmatpush1.bf16.msra.mxu1 %v2240_v27  ;;  %v160_v26 = vld [vmem:[#allocation2 + $0x348] sm:$0xff] }
  0xa6   :  { %1774 = vmatprep.subr.bf16.mxu0 %v2231_v28  ;;  %1815 = vmatprep.subr.bf16.mxu1 %v2233_v29  ;;  %v164_v27 = vld [vmem:[#allocation2 + $0x368] sm:$0xff]  ;;  %v2302_v28 = vcombine.low %v167_v15, %v171_v16  ;;  %v2304_v29 = vcombine.low %v168_v18, %v172_v19  ;;  %v2251_v15 = vcombine.high %v113_v8, %v117_v9  ;;  %v105_v18 = vld [vmem:[#allocation2 + $0x190] sm:$0xff] }
  0xa7   :  { %v2297_v31 = vcombine.high %v160_v26, %v164_v27  ;;  %v109_v19 = vld [vmem:[#allocation2 + $0x1b0] sm:$0xff] }
  0xa9   :  { %1775 = vmatpush1.bf16.msra.mxu0 %v2230_v34  ;;  %1816 = vmatpush1.bf16.msra.mxu1 %v2232_v12  ;;  %v152_v34 = vld [vmem:[#allocation2 + $0x308] sm:$0xff] }
  0xaa   :  { %1776 = vmatprep.subr.bf16.mxu0 %v2223_v35  ;;  %1817 = vmatprep.subr.bf16.mxu1 %v2225_v36  ;;  %v156_v12 = vld [vmem:[#allocation2 + $0x328] sm:$0xff]  ;;  %v2294_v35 = vcombine.low %v159_v24, %v163_v25  ;;  %v2296_v36 = vcombine.low %v160_v26, %v164_v27  ;;  %v2243_v25 = vcombine.high %v105_v18, %v109_v19  ;;  %v97_v27 = vld [vmem:[#allocation2 + $0x150] sm:$0xff] }
  0xab   :  { %v2289_v38 = vcombine.high %v152_v34, %v156_v12 }
  0xad   :  { %1777 = vmatpush1.bf16.msra.mxu0 %v2222_v57  ;;  %1818 = vmatpush1.bf16.msra.mxu1 %v2224_v41  ;;  %v144_v57 = vld [vmem:[#allocation2 + $0x2c8] sm:$0xff] }
  0xae   :  { %1778 = vmatprep.subr.bf16.mxu0 %v2215_v42  ;;  %1819 = vmatprep.subr.bf16.mxu1 %v2217_v43  ;;  %v148_v41 = vld [vmem:[#allocation2 + $0x2e8] sm:$0xff]  ;;  %v2286_v42 = vcombine.low %v151_v32, %v155_v33  ;;  %v2288_v43 = vcombine.low %v152_v34, %v156_v12  ;;  %v89_v34 = vld [vmem:[#allocation2 + $0x110] sm:$0xff] }
  0xaf   :  { %v2281_v45 = vcombine.high %v144_v57, %v148_v41  ;;  %v93_v12 = vld [vmem:[#allocation2 + $0x130] sm:$0xff] }
  0xb1   :  { %1779 = vmatpush1.bf16.msra.mxu0 %v2214_v48  ;;  %1820 = vmatpush1.bf16.msra.mxu1 %v2216_v49  ;;  %v136_v48 = vld [vmem:[#allocation2 + $0x288] sm:$0xff] }
  0xb2   :  { %1780 = vmatprep.subr.bf16.mxu0 %v2207_v50  ;;  %1821 = vmatprep.subr.bf16.mxu1 %v2209_v51  ;;  %v140_v49 = vld [vmem:[#allocation2 + $0x2a8] sm:$0xff]  ;;  %v2278_v50 = vcombine.low %v143_v39, %v147_v40  ;;  %v2280_v51 = vcombine.low %v144_v57, %v148_v41  ;;  %v2227_v39 = vcombine.high %v89_v34, %v93_v12  ;;  %v81_v57 = vld [vmem:[#allocation2 + $0xd0] sm:$0xff] }
  0xb3   :  { %v2273_v54 = vcombine.high %v136_v48, %v140_v49  ;;  %v85_v41 = vld [vmem:[#allocation2 + $0xf0] sm:$0xff] }
  0xb5   :  { %1781 = vmatpush1.bf16.msra.mxu0 %v2206_v58  ;;  %1822 = vmatpush1.bf16.msra.mxu1 %v2208_v59  ;;  %v128_v58 = vld [vmem:[#allocation2 + $0x248] sm:$0xff] }
  0xb6   :  { %1782 = vmatprep.subr.bf16.mxu0 %v2199_v60  ;;  %1823 = vmatprep.subr.bf16.mxu1 %v2201_v61  ;;  %v132_v59 = vld [vmem:[#allocation2 + $0x268] sm:$0xff]  ;;  %v2270_v60 = vcombine.low %v135_v46, %v139_v47  ;;  %v2272_v61 = vcombine.low %v136_v48, %v140_v49  ;;  %v2219_v46 = vcombine.high %v81_v57, %v85_v41  ;;  %v73_v47 = vld [vmem:[#allocation2 + $0x90] sm:$0xff]  ;;  %v74_v49 = vld [vmem:[#allocation2 + $0x98] sm:$0xff] }
  0xb7   :  { %v2265_v63 = vcombine.high %v128_v58, %v132_v59  ;;  %v77_v48 = vld [vmem:[#allocation2 + $0xb0] sm:$0xff] }
  0xb9   :  { %1783 = vmatpush1.bf16.msra.mxu0 %v2198_v2  ;;  %1824 = vmatpush1.bf16.msra.mxu1 %v2200_v3  ;;  %v120_v2 = vld [vmem:[#allocation2 + $0x208] sm:$0xff] }
  0xba   :  { %1784 = vmatprep.subr.bf16.mxu0 %v2191_v4  ;;  %1825 = vmatprep.subr.bf16.mxu1 %v2193_v5  ;;  %v124_v3 = vld [vmem:[#allocation2 + $0x228] sm:$0xff]  ;;  %v2262_v4 = vcombine.low %v127_v55, %v131_v56  ;;  %v2264_v5 = vcombine.low %v128_v58, %v132_v59  ;;  %v65_v56 = vld [vmem:[#allocation2 + $0x50] sm:$0xff]  ;;  %v66_v59 = vld [vmem:[#allocation2 + $0x58] sm:$0xff] }
  0xbb   :  { %v2257_v7 = vcombine.high %v120_v2, %v124_v3  ;;  %v69_v58 = vld [vmem:[#allocation2 + $0x70] sm:$0xff] }
  0xbd   :  { %1785 = vmatpush1.bf16.msra.mxu0 %v2190_v10  ;;  %1826 = vmatpush1.bf16.msra.mxu1 %v2192_v11  ;;  %v114_v10 = vld [vmem:[#allocation2 + $0x1d8] sm:$0xff] }
  0xbe   :  { %1786 = vmatprep.subr.bf16.mxu0 %v2311_v13  ;;  %1827 = vmatprep.subr.bf16.mxu1 %v2313_v14  ;;  %v118_v11 = vld [vmem:[#allocation2 + $0x1f8] sm:$0xff]  ;;  %v2254_v13 = vcombine.low %v119_v0, %v123_v1  ;;  %v2256_v14 = vcombine.low %v120_v2, %v124_v3  ;;  %v57_v1 = vld [vmem:[#allocation2 + $0x10] sm:$0xff] }
  0xbf   :  { %v2253_v16 = vcombine.high %v114_v10, %v118_v11  ;;  %v2252_v24 = vcombine.low %v114_v10, %v118_v11  ;;  %v61_v2 = vld [vmem:[#allocation2 + $0x30] sm:$0xff]  ;;  %v58_v3 = vld [vmem:[#allocation2 + $0x18] sm:$0xff] }
  0xc0   :  { %v181_v10 = vld [vmem:[#allocation2 + $0x3f0] sm:$0xff]  ;;  %v178_v11 = vld [vmem:[#allocation2 + $0x3d8] sm:$0xff] }
  0xc1   :  { %1787 = vmatpush2.bf16.msra.mxu0 %v2310_v20  ;;  %1828 = vmatpush2.bf16.msra.mxu1 %v2312_v21  ;;  %v2516_v20 = vcombine.low %v2504_v17, %v2504_v17  ;;  %v106_v21 = vld [vmem:[#allocation2 + $0x198] sm:$0xff]  ;;  %v2242_v17 = vcombine.low %v105_v18, %v109_v19  ;;  %v169_v19 = vld [vmem:[#allocation2 + $0x390] sm:$0xff] }
  0xc2   :  { %1788 = vmatprep.subr.bf16.mxu0 %v2303_v22  ;;  %1829 = vmatprep.subr.bf16.mxu1 %v2305_v53  ;;  %v110_v22 = vld [vmem:[#allocation2 + $0x1b8] sm:$0xff]  ;;  %v2250_v53 = vcombine.low %v113_v8, %v117_v9  ;;  %v177_v9 = vld [vmem:[#allocation2 + $0x3d0] sm:$0xff] }
  0xc3   :  { %v2245_v26 = vcombine.high %v106_v21, %v110_v22 }
  0xc5   :  { %1789 = vmatpush2.bf16.msra.mxu0 %v2302_v28  ;;  %1830 = vmatpush2.bf16.msra.mxu1 %v2304_v29  ;;  %v101_v28 = vld [vmem:[#allocation2 + $0x170] sm:$0xff]  ;;  %v98_v29 = vld [vmem:[#allocation2 + $0x158] sm:$0xff] }
  0xc6   :  { %1790 = vmatprep.subr.bf16.mxu0 %v2295_v30  ;;  %1831 = vmatprep.subr.bf16.mxu1 %v2297_v31  ;;  %v102_v30 = vld [vmem:[#allocation2 + $0x178] sm:$0xff]  ;;  %v2244_v31 = vcombine.low %v106_v21, %v110_v22  ;;  %v2235_v32 = vcombine.high %v97_v27, %v101_v28  ;;  %v173_v21 = vld [vmem:[#allocation2 + $0x3b0] sm:$0xff] }
  0xc7   :  { %v2237_v33 = vcombine.high %v98_v29, %v102_v30  ;;  %v170_v22 = vld [vmem:[#allocation2 + $0x398] sm:$0xff] }
  0xc9   :  { %1791 = vmatpush2.bf16.msra.mxu0 %v2294_v35  ;;  %1832 = vmatpush2.bf16.msra.mxu1 %v2296_v36  ;;  %v90_v35 = vld [vmem:[#allocation2 + $0x118] sm:$0xff] }
  0xca   :  { %1792 = vmatprep.subr.bf16.mxu0 %v2287_v37  ;;  %1833 = vmatprep.subr.bf16.mxu1 %v2289_v38  ;;  %v94_v36 = vld [vmem:[#allocation2 + $0x138] sm:$0xff]  ;;  %v2234_v37 = vcombine.low %v97_v27, %v101_v28  ;;  %v2236_v38 = vcombine.low %v98_v29, %v102_v30  ;;  %v161_v28 = vld [vmem:[#allocation2 + $0x350] sm:$0xff] }
  0xcb   :  { %v2229_v40 = vcombine.high %v90_v35, %v94_v36  ;;  %v165_v29 = vld [vmem:[#allocation2 + $0x370] sm:$0xff]  ;;  %v162_v30 = vld [vmem:[#allocation2 + $0x358] sm:$0xff] }
  0xcd   :  { %1793 = vmatpush2.bf16.msra.mxu0 %v2286_v42  ;;  %1834 = vmatpush2.bf16.msra.mxu1 %v2288_v43  ;;  %v82_v42 = vld [vmem:[#allocation2 + $0xd8] sm:$0xff] }
  0xce   :  { %1794 = vmatprep.subr.bf16.mxu0 %v2279_v44  ;;  %1835 = vmatprep.subr.bf16.mxu1 %v2281_v45  ;;  %v86_v43 = vld [vmem:[#allocation2 + $0xf8] sm:$0xff]  ;;  %v2226_v44 = vcombine.low %v89_v34, %v93_v12  ;;  %v2228_v45 = vcombine.low %v90_v35, %v94_v36  ;;  %v153_v12 = vld [vmem:[#allocation2 + $0x310] sm:$0xff] }
  0xcf   :  { %v157_v35 = vld [vmem:[#allocation2 + $0x330] sm:$0xff]  ;;  %v154_v36 = vld [vmem:[#allocation2 + $0x318] sm:$0xff] }
  0xd1   :  { %1795 = vmatpush2.bf16.msra.mxu0 %v2278_v50  ;;  %1836 = vmatpush2.bf16.msra.mxu1 %v2280_v51  ;;  %v78_v50 = vld [vmem:[#allocation2 + $0xb8] sm:$0xff]  ;;  %v2218_v51 = vcombine.low %v81_v57, %v85_v41  ;;  %v145_v41 = vld [vmem:[#allocation2 + $0x2d0] sm:$0xff] }
  0xd2   :  { %1796 = vmatprep.subr.bf16.mxu0 %v2271_v52  ;;  %1837 = vmatprep.subr.bf16.mxu1 %v2273_v54  ;;  %v2220_v52 = vcombine.low %v82_v42, %v86_v43  ;;  %v2211_v54 = vcombine.high %v73_v47, %v77_v48  ;;  %v2213_v55 = vcombine.high %v74_v49, %v78_v50 }
  0xd5   :  { %1797 = vmatpush2.bf16.msra.mxu0 %v2270_v60  ;;  %1838 = vmatpush2.bf16.msra.mxu1 %v2272_v61  ;;  %v70_v60 = vld [vmem:[#allocation2 + $0x78] sm:$0xff]  ;;  %v2210_v61 = vcombine.low %v73_v47, %v77_v48  ;;  %v137_v48 = vld [vmem:[#allocation2 + $0x290] sm:$0xff] }
  0xd6   :  { %1798 = vmatprep.subr.bf16.mxu0 %v2263_v62  ;;  %1839 = vmatprep.subr.bf16.mxu1 %v2265_v63  ;;  %v2212_v62 = vcombine.low %v74_v49, %v78_v50  ;;  %v2203_v63 = vcombine.high %v65_v56, %v69_v58  ;;  %v2205_v0 = vcombine.high %v66_v59, %v70_v60  ;;  %v141_v49 = vld [vmem:[#allocation2 + $0x2b0] sm:$0xff]  ;;  %v138_v50 = vld [vmem:[#allocation2 + $0x298] sm:$0xff] }
  0xd9   :  { %1799 = vmatpush2.bf16.msra.mxu0 %v2262_v4  ;;  %1840 = vmatpush2.bf16.msra.mxu1 %v2264_v5  ;;  %v62_v4 = vld [vmem:[#allocation2 + $0x38] sm:$0xff]  ;;  %v2202_v5 = vcombine.low %v65_v56, %v69_v58  ;;  %v129_v58 = vld [vmem:[#allocation2 + $0x250] sm:$0xff] }
  0xda   :  { %1800 = vmatprep.subr.bf16.mxu0 %v2255_v6  ;;  %1841 = vmatprep.subr.bf16.mxu1 %v2257_v7  ;;  %v2204_v6 = vcombine.low %v66_v59, %v70_v60  ;;  %v2195_v7 = vcombine.high %v57_v1, %v61_v2  ;;  %v2197_v8 = vcombine.high %v58_v3, %v62_v4  ;;  %v133_v59 = vld [vmem:[#allocation2 + $0x270] sm:$0xff]  ;;  %v130_v60 = vld [vmem:[#allocation2 + $0x258] sm:$0xff] }
  0xdd   :  { %1801 = vmatpush2.bf16.msra.mxu0 %v2254_v13  ;;  %1842 = vmatpush2.bf16.msra.mxu1 %v2256_v14  ;;  %v182_v13 = vld [vmem:[#allocation2 + $0x3f8] sm:$0xff]  ;;  %v2194_v14 = vcombine.low %v57_v1, %v61_v2  ;;  %v121_v2 = vld [vmem:[#allocation2 + $0x210] sm:$0xff] }
  0xde   :  { %1852 = vmatprep.subr.bf16.mxu0 %v2251_v15  ;;  %1893 = vmatprep.subr.bf16.mxu1 %v2253_v16  ;;  %v2196_v15 = vcombine.low %v58_v3, %v62_v4  ;;  %v2315_v16 = vcombine.high %v177_v9, %v181_v10  ;;  %v2317_v18 = vcombine.high %v178_v11, %v182_v13  ;;  %v125_v3 = vld [vmem:[#allocation2 + $0x230] sm:$0xff]  ;;  %v122_v4 = vld [vmem:[#allocation2 + $0x218] sm:$0xff] }
  0xe0   :  { %1803 = vmatmul.mubr.bf16.vlgmr.msra.gmra.mxu0 %v2516_v20  ;;  %1844 = vmatmul.mubr.bf16.vlgmr.msra.gmra.mxu1 %v2516_v20 }
  0xe1   :  { %1853 = vmatpush1.bf16.msra.mxu0 %v2250_v53  ;;  %1894 = vmatpush1.bf16.msra.mxu1 %v2252_v24  ;;  %v174_v53 = vld [vmem:[#allocation2 + $0x3b8] sm:$0xff]  ;;  %v2314_v24 = vcombine.low %v177_v9, %v181_v10  ;;  %v2258_v10 = vcombine.low %v121_v2, %v125_v3 }
  0xe2   :  { %1854 = vmatprep.subr.bf16.mxu0 %v2243_v25  ;;  %1895 = vmatprep.subr.bf16.mxu1 %v2245_v26  ;;  %v2316_v25 = vcombine.low %v178_v11, %v182_v13  ;;  %v2307_v26 = vcombine.high %v169_v19, %v173_v21  ;;  %v2309_v27 = vcombine.high %v170_v22, %v174_v53 }
  0xe3   :  { %1884 = vmatprep.mubr.bf16.mxu0 %v2508_v23  ;;  %1925 = vmatprep.mubr.bf16.mxu1 %v2508_v23  ;;  %v2221_v23 = vcombine.high %v82_v42, %v86_v43  ;;  %v149_v42 = vld [vmem:[#allocation2 + $0x2f0] sm:$0xff]  ;;  %v146_v43 = vld [vmem:[#allocation2 + $0x2d8] sm:$0xff] }
  0xe5   :  { %1855 = vmatpush1.bf16.msra.mxu0 %v2242_v17  ;;  %1896 = vmatpush1.bf16.msra.mxu1 %v2244_v31  ;;  %v166_v17 = vld [vmem:[#allocation2 + $0x378] sm:$0xff]  ;;  %v2306_v31 = vcombine.low %v169_v19, %v173_v21 }
  0xe6   :  { %1856 = vmatprep.subr.bf16.mxu0 %v2235_v32  ;;  %1897 = vmatprep.subr.bf16.mxu1 %v2237_v33  ;;  %v2308_v32 = vcombine.low %v170_v22, %v174_v53  ;;  %v2299_v33 = vcombine.high %v161_v28, %v165_v29  ;;  %v2301_v34 = vcombine.high %v162_v30, %v166_v17 }
  0xe9   :  { %1857 = vmatpush1.bf16.msra.mxu0 %v2234_v37  ;;  %1898 = vmatpush1.bf16.msra.mxu1 %v2236_v38  ;;  %v158_v37 = vld [vmem:[#allocation2 + $0x338] sm:$0xff]  ;;  %v2298_v38 = vcombine.low %v161_v28, %v165_v29 }
  0xea   :  { %1858 = vmatprep.subr.bf16.mxu0 %v2227_v39  ;;  %1899 = vmatprep.subr.bf16.mxu1 %v2229_v40  ;;  %v2300_v39 = vcombine.low %v162_v30, %v166_v17  ;;  %v2291_v40 = vcombine.high %v153_v12, %v157_v35  ;;  %v2293_v57 = vcombine.high %v154_v36, %v158_v37  ;;  %v1936_v17 = vlaneseq }
  0xed   :  { %1859 = vmatpush1.bf16.msra.mxu0 %v2226_v44  ;;  %1900 = vmatpush1.bf16.msra.mxu1 %v2228_v45  ;;  %v150_v44 = vld [vmem:[#allocation2 + $0x2f8] sm:$0xff]  ;;  %v2290_v45 = vcombine.low %v153_v12, %v157_v35 }
  0xee   :  { %1860 = vmatprep.subr.bf16.mxu0 %v2219_v46  ;;  %1901 = vmatprep.subr.bf16.mxu1 %v2221_v23  ;;  %v2292_v46 = vcombine.low %v154_v36, %v158_v37  ;;  %v2283_v23 = vcombine.high %v145_v41, %v149_v42  ;;  %v2285_v47 = vcombine.high %v146_v43, %v150_v44 }
  0xf1   :  { %1861 = vmatpush1.bf16.msra.mxu0 %v2218_v51  ;;  %1902 = vmatpush1.bf16.msra.mxu1 %v2220_v52  ;;  %v142_v51 = vld [vmem:[#allocation2 + $0x2b8] sm:$0xff]  ;;  %v2282_v52 = vcombine.low %v145_v41, %v149_v42 }
  0xf2   :  { %1862 = vmatprep.subr.bf16.mxu0 %v2211_v54  ;;  %1903 = vmatprep.subr.bf16.mxu1 %v2213_v55  ;;  %v2284_v54 = vcombine.low %v146_v43, %v150_v44  ;;  %v2275_v55 = vcombine.high %v137_v48, %v141_v49  ;;  %v2277_v56 = vcombine.high %v138_v50, %v142_v51 }
  0xf5   :  { %1863 = vmatpush1.bf16.msra.mxu0 %v2210_v61  ;;  %1904 = vmatpush1.bf16.msra.mxu1 %v2212_v62  ;;  %v134_v61 = vld [vmem:[#allocation2 + $0x278] sm:$0xff]  ;;  %v2274_v62 = vcombine.low %v137_v48, %v141_v49 }
  0xf6   :  { %1864 = vmatprep.subr.bf16.mxu0 %v2203_v63  ;;  %1905 = vmatprep.subr.bf16.mxu1 %v2205_v0  ;;  %v2276_v63 = vcombine.low %v138_v50, %v142_v51  ;;  %v2267_v0 = vcombine.high %v129_v58, %v133_v59  ;;  %v2269_v1 = vcombine.high %v130_v60, %v134_v61 }
  0xf9   :  { %1865 = vmatpush1.bf16.msra.mxu0 %v2202_v5  ;;  %1906 = vmatpush1.bf16.msra.mxu1 %v2204_v6  ;;  %v126_v5 = vld [vmem:[#allocation2 + $0x238] sm:$0xff]  ;;  %v2266_v6 = vcombine.low %v129_v58, %v133_v59 }
  0xfa   :  { %1866 = vmatprep.subr.bf16.mxu0 %v2195_v7  ;;  %1907 = vmatprep.subr.bf16.mxu1 %v2197_v8  ;;  %v2268_v7 = vcombine.low %v130_v60, %v134_v61  ;;  %v2259_v8 = vcombine.high %v121_v2, %v125_v3  ;;  %v2261_v9 = vcombine.high %v122_v4, %v126_v5 }
  0xfb   :  { %v2260_v11 = vcombine.low %v122_v4, %v126_v5 }
  0xfd   :  { %1867 = vmatpush1.bf16.msra.mxu0 %v2194_v14  ;;  %1908 = vmatpush1.bf16.msra.mxu1 %v2196_v15 }
  0xfe   :  { %1868 = vmatprep.subr.bf16.mxu0 %v2315_v16  ;;  %1909 = vmatprep.subr.bf16.mxu1 %v2317_v18 }
 0x101   :  { %1869 = vmatpush2.bf16.msra.mxu0 %v2314_v24  ;;  %1910 = vmatpush2.bf16.msra.mxu1 %v2316_v25 }
 0x102   :  { %1870 = vmatprep.subr.bf16.mxu0 %v2307_v26  ;;  %1911 = vmatprep.subr.bf16.mxu1 %v2309_v27 }
 0x105   :  { %1871 = vmatpush2.bf16.msra.mxu0 %v2306_v31  ;;  %1912 = vmatpush2.bf16.msra.mxu1 %v2308_v32  ;;  %v2528_v31 = vshrl.u32 %v1936_v17, 7  ;;  %v2534_v32 = vld [vmem:[%s2573_s5] sm:$0xff] }
 0x106   :  { %1872 = vmatprep.subr.bf16.mxu0 %v2299_v33  ;;  %1913 = vmatprep.subr.bf16.mxu1 %v2301_v34 }
 0x107   :  { %v1942_v33 = vsub.s32 1, %v2528_v31  ;;  %v1950_v48 = vsub.s32 3, %v2528_v31  ;;  %v1954_v3 = vsub.s32 4, %v2528_v31  ;;  %v1958_v4 = vsub.s32 5, %v2528_v31 }
 0x109   :  { %1873 = vmatpush2.bf16.msra.mxu0 %v2298_v38  ;;  %1914 = vmatpush2.bf16.msra.mxu1 %v2300_v39  ;;  %v1943_v37 = vrot.slane %v2534_v32, %v1942_v33  ;;  %v1955_v5 = vrot.slane %v2534_v32, %v1954_v3 }
 0x10a   :  { %1874 = vmatprep.subr.bf16.mxu0 %v2291_v40  ;;  %1915 = vmatprep.subr.bf16.mxu1 %v2293_v57 }
 0x10d   :  { %1875 = vmatpush2.bf16.msra.mxu0 %v2290_v45  ;;  %1916 = vmatpush2.bf16.msra.mxu1 %v2292_v46 }
 0x10e   :  { %1876 = vmatprep.subr.bf16.mxu0 %v2283_v23  ;;  %1917 = vmatprep.subr.bf16.mxu1 %v2285_v47  ;;  %v1946_v47 = vsub.s32 2, %v2528_v31 }
 0x110   :  { %v1947_v50 = vrot.slane %v2534_v32, %v1946_v47 }
 0x111   :  { %1877 = vmatpush2.bf16.msra.mxu0 %v2282_v52  ;;  %1918 = vmatpush2.bf16.msra.mxu1 %v2284_v54  ;;  %v1951_v52 = vrot.slane %v2534_v32, %v1950_v48 }
 0x112   :  { %1878 = vmatprep.subr.bf16.mxu0 %v2275_v55  ;;  %1919 = vmatprep.subr.bf16.mxu1 %v2277_v56 }
 0x115   :  { %1879 = vmatpush2.bf16.msra.mxu0 %v2274_v62  ;;  %1920 = vmatpush2.bf16.msra.mxu1 %v2276_v63 }
 0x116   :  { %1880 = vmatprep.subr.bf16.mxu0 %v2267_v0  ;;  %1921 = vmatprep.subr.bf16.mxu1 %v2269_v1 }
 0x119   :  { %1881 = vmatpush2.bf16.msra.mxu0 %v2266_v6  ;;  %1922 = vmatpush2.bf16.msra.mxu1 %v2268_v7 }
 0x11a   :  { %1882 = vmatprep.subr.bf16.mxu0 %v2259_v8  ;;  %1923 = vmatprep.subr.bf16.mxu1 %v2261_v9  ;;  %v1959_v9 = vrot.slane %v2534_v32, %v1958_v4 }
 0x11d   :  { %1883 = vmatpush2.bf16.msra.mxu0 %v2258_v10  ;;  %1924 = vmatpush2.bf16.msra.mxu1 %v2260_v11 }
 0x120   :  { %v993_v13 = vpop.f32.mrf.mxu0  ;;  %1885 = vmatmul.mubr.bf16.vlgmr.msra.gmra.mxu0 %v2516_v20  ;;  %1926 = vmatmul.mubr.bf16.vlgmr.msra.gmra.mxu1 %v2516_v20  ;;  %v1034_v14 = vpop.f32.mrf.mxu1  ;;  %v1938_v20 = vsub.s32 0, %v2528_v31 }
 0x122   :  { %v995_v15 = vpop.f32.mrf.mxu0  ;;  %v1036_v16 = vpop.f32.mrf.mxu1  ;;  %v1939_v34 = vrot.slane %v2534_v32, %v1938_v20 }
 0x124   :  { %v997_v18 = vpop.f32.mrf.mxu0  ;;  %v1038_v19 = vpop.f32.mrf.mxu1 }
 0x126   :  { %v998_v21 = vpop.f32.mrf.mxu0  ;;  %v1039_v22 = vpop.f32.mrf.mxu1 }
 0x127   :  { %v1966_v22 = vsub.s32 7, %v2528_v31 }
 0x129   :  { %v1967_v17 = vrot.slane %v2534_v32, %v1966_v22 }
 0x160   :  { %v1075_v53 = vpop.f32.mrf.mxu0  ;;  %v2524_v24 = vpop.f32.mrf.mxu1 }
 0x162   :  { %v1077_v25 = vpop.f32.mrf.mxu0  ;;  %v2526_v26 = vpop.f32.mrf.mxu1 }
 0x164   :  { %v1079_v27 = vpop.f32.mrf.mxu0  ;;  %v1120_v28 = vpop.f32.mrf.mxu1 }
 0x166   :  { %v1080_v29 = vpop.f32.mrf.mxu0  ;;  %v1121_v30 = vpop.f32.mrf.mxu1 }
 0x1a0   :  { %v1804_v12 = vpop.f32.mrf.mxu0  ;;  %v1845_v36 = vpop.f32.mrf.mxu1 }
 0x1a1   :  { %v1805_v35 = vadd.f32 %v1804_v12, %v993_v13  ;;  %v1846_v49 = vadd.f32 %v1845_v36, %v1034_v14 }
 0x1a2   :  { %v1806_v38 = vpop.f32.mrf.mxu0  ;;  %v1847_v57 = vpop.f32.mrf.mxu1 }
 0x1a3   :  { %v1976_v39 = vadd.f32 %v1939_v34, %v1805_v35  ;;  %v1807_v40 = vadd.f32 %v1806_v38, %v995_v15  ;;  %v1848_v51 = vadd.f32 %v1847_v57, %v1036_v16  ;;  %v1978_v54 = vadd.f32 %v1947_v50, %v1846_v49  ;;  %v1984_v38 = vld [vmem:[%s2570_s2] sm:$0xff] }
 0x1a4   :  { %v1808_v41 = vpop.f32.mrf.mxu0  ;;  %v1849_v44 = vpop.f32.mrf.mxu1  ;;  %v1962_v15 = vsub.s32 6, %v2528_v31 }
 0x1a5   :  { %v2320_v42 = vmul.f32 -1.442695, %v1976_v39  ;;  %v1977_v43 = vadd.f32 %v1943_v37, %v1807_v40  ;;  %v1979_v56 = vadd.f32 %v1951_v52, %v1848_v51  ;;  %v1985_v40 = vld [vmem:[%s2570_s2 + $0x8] sm:$0xff] }
 0x1a6   :  { %v1809_v45 = vpop.f32.mrf.mxu0  ;;  %v1850_v23 = vpop.f32.mrf.mxu1  ;;  %v1963_v30 = vrot.slane %v2534_v32, %v1962_v15 }
 0x1a7   :  { %2333 = vpow2.f32 %v2320_v42  ;;  %v2321_v46 = vmul.f32 -1.442695, %v1977_v43 }
 0x1a9   :  { %2335 = vpow2.f32 %v2321_v46 }
 0x1aa   :  { %2337 = vtanh.f32 %v1978_v54 }
 0x1b4   :  { %v2334_v55 = vpop.eup %2333 }
 0x1b5   :  { %v2006_v58 = vadd.f32 1.0, %v2334_v55 }
 0x1b6   :  { %v2336_v59 = vpop.eup %2335 }
 0x1b7   :  { %2339 = vrcp.f32 %v2006_v58  ;;  %v2007_v60 = vadd.f32 1.0, %v2336_v59  ;;  %v2338_v61 = vpop.eup %2337 }
 0x1b8   :  { %2341 = vtanh.f32 %v1979_v56 }
 0x1b9   :  { %2343 = vrcp.f32 %v2007_v60 }
 0x1c4   :  { %v2340_v62 = vpop.eup %2339 }
 0x1c5   :  { %v2342_v63 = vpop.eup %2341  ;;  %v2014_v0 = vmul.f32 %v2340_v62, %v2338_v61 }
 0x1c6   :  { %v2344_v1 = vpop.eup %2343 }
 0x1c7   :  { %v2015_v2 = vmul.f32 %v2344_v1, %v2342_v63 }
 0x1e0   :  { %v1886_v6 = vpop.f32.mrf.mxu0  ;;  %v1927_v8 = vpop.f32.mrf.mxu1 }
 0x1e1   :  { %v1887_v7 = vadd.f32 %v1886_v6, %v1075_v53  ;;  %v1928_v53 = vadd.f32 %v1927_v8, %v2524_v24 }
 0x1e2   :  { %v1888_v10 = vpop.f32.mrf.mxu0  ;;  %v1929_v14 = vpop.f32.mrf.mxu1 }
 0x1e3   :  { %v1980_v11 = vadd.f32 %v1955_v5, %v1887_v7  ;;  %v1889_v13 = vadd.f32 %v1888_v10, %v1077_v25  ;;  %v1930_v25 = vadd.f32 %v1929_v14, %v2526_v26  ;;  %v1982_v20 = vadd.f32 %v1963_v30, %v1928_v53 }
 0x1e4   :  { %v1890_v16 = vpop.f32.mrf.mxu0  ;;  %v1931_v21 = vpop.f32.mrf.mxu1 }
 0x1e5   :  { %v2318_v18 = vmul.f32 -1.442695, %v1980_v11  ;;  %v1981_v19 = vadd.f32 %v1959_v9, %v1889_v13  ;;  %v1983_v33 = vadd.f32 %v1967_v17, %v1930_v25  ;;  %v2322_v34 = vmul.f32 -1.442695, %v1982_v20 }
 0x1e6   :  { %v1891_v27 = vpop.f32.mrf.mxu0  ;;  %v1932_v29 = vpop.f32.mrf.mxu1 }
 0x1e7   :  { %2345 = vpow2.f32 %v2318_v18  ;;  %v2319_v28 = vmul.f32 -1.442695, %v1981_v19  ;;  %v2323_v12 = vmul.f32 -1.442695, %v1983_v33 }
 0x1e9   :  { %2347 = vpow2.f32 %v2319_v28 }
 0x1ea   :  { %2349 = vpow2.f32 %v2322_v34 }
 0x1eb   :  { %2351 = vpow2.f32 %v2323_v12 }
 0x1f4   :  { %v2346_v35 = vpop.eup %2345 }
 0x1f5   :  { %v1992_v31 = vadd.f32 1.0, %v2346_v35 }
 0x1f6   :  { %v2348_v36 = vpop.eup %2347 }
 0x1f7   :  { %2353 = vrcp.f32 %v1992_v31  ;;  %v1993_v37 = vadd.f32 1.0, %v2348_v36  ;;  %v2350_v24 = vpop.eup %2349 }
 0x1f8   :  { %v2352_v26 = vpop.eup %2351  ;;  %v2026_v32 = vadd.f32 1.0, %v2350_v24 }
 0x1f9   :  { %2355 = vrcp.f32 %v1993_v37  ;;  %v2027_v42 = vadd.f32 1.0, %v2352_v26 }
 0x1fa   :  { %2357 = vrcp.f32 %v2026_v32 }
 0x204   :  { %v2354_v39 = vpop.eup %2353 }
 0x205   :  { %v1998_v57 = vmul.f32 %v2354_v39, %v1984_v38 }
 0x206   :  { %v2356_v41 = vpop.eup %2355 }
 0x207   :  { %v1999_v43 = vmul.f32 %v2356_v41, %v1985_v40  ;;  %v2016_v44 = vadd.f32 %v2014_v0, %v1998_v57 }
 0x209   :  { %v2017_v45 = vadd.f32 %v2015_v2, %v1999_v43  ;;  %2359 = vtanh.f32 %v2016_v44  ;;  %2034 = vst [vmem:[#allocation7] sm:$0xff] %v2016_v44 }
 0x20a   :  { %2361 = vrcp.f32 %v2027_v42 }
 0x20b   :  { %2363 = vtanh.f32 %v2017_v45  ;;  %2035 = vst [vmem:[#allocation7 + $0x8] sm:$0xff] %v2017_v45 }
 0x20c   :  { %2416 = shalt.err (!%p2413_p0)
}
 0x20d   :  { %2049 = dma.vmem_to_hbm [thread:$0]  %s2047_s19, 256, %s2575_s7, [#allocation4]   ;;  %v2358_v46 = vpop.eup %2357 }
 0x216   :  { %v2360_v23 = vpop.eup %2359 }
 0x217   :  { %v2362_v47 = vpop.eup %2361  ;;  %v2032_v48 = vmul.f32 %v2360_v23, %v2358_v46 }
 0x218   :  { %v2364_v49 = vpop.eup %2363 }
 0x219   :  { %v2033_v50 = vmul.f32 %v2364_v49, %v2362_v47  ;;  %2036 = vst [vmem:[%s2574_s6] sm:$0xff] %v2032_v48 }
 0x21b   :  { %2037 = vst [vmem:[%s2574_s6 + $0x8] sm:$0xff] %v2033_v50 }
 0x21c   :  { %2429 = dma.done.wait [#allocation4], 256  }
 0x21d   :  { %2430 = vsyncadd [#allocation4], 4294967040 }
 0x21e   :  { %2055 = vsyncpa [#allocation3], 1 }
 0x21f   :  { %2056 = vsyncpa [#allocation6], 1 }
 0x220   :  { %2057 = vsyncpa [#allocation4], 1 }

</bundles_post_ra>
